<compile_context>
chip_gen: v6e
topology: v6e:2x2x1
jax: 0.10.0
libtpu: 0.0.40
codegen_flags: <defaults>
</compile_context>

<pallas_src>
import functools

import jax
import jax.numpy as jnp
import numpy as np
from jax import lax
from jax.experimental import pallas as pl
from jax.experimental.pallas import tpu as pltpu


# ----------------------------------------------------------------------------
# Fused kernel: 1x1 conv+BN+ReLU -> 3x3 conv+BN+ReLU (new channels only)
# ----------------------------------------------------------------------------
def dense_unit_kernel(x_ref, w1_ref, s1_ref, b1_ref, w2_ref, s2_ref, b2_ref,
                      o_ref, *, H, TH):
    # x_ref : (H_pad+2, W+2, Cin) bf16 zero-padded full image for batch n
    #         (block index depends only on n -> DMA'd once per image).
    # w1_ref: (Cin, Cmid)   bf16
    # s1/b1 : (1, Cmid)     f32 folded BN of conv1
    # w2_ref: (9*Cmid, Cg)  bf16 (3x3 taps flattened ky-major, kx, ci)
    # s2/b2 : (1, Cg)       f32 folded BN of conv2
    # o_ref : (TH, W, Cg)   f32 lane-dense output strip (new channels only)
    W, Cg = o_ref.shape[1], o_ref.shape[2]
    Wp = x_ref.shape[1]                      # W + 2
    Cin = x_ref.shape[-1]
    Cmid = w1_ref.shape[1]

    s = pl.program_id(1)
    r0 = pl.multiple_of(s * TH, TH)          # first output row of this strip

    # ---- stage 1: 1x1 conv + BN + ReLU over strip + halo, ONE matmul --------
    # padded rows r0 .. r0+TH+1  ==  image rows r0-1 .. r0+TH (with halo)
    xw = x_ref[pl.ds(r0, TH + 2), :, :]                      # (TH+2, Wp, Cin)
    y1 = jnp.dot(xw.reshape((TH + 2) * Wp, Cin), w1_ref[...],
                 preferred_element_type=jnp.float32)
    y1 = jnp.maximum(y1 * s1_ref[...] + b1_ref[...], 0.0)
    y1 = y1.reshape(TH + 2, Wp, Cmid)
    # Zero positions that fall outside the real image: the wrapper padded x
    # with zeros, but conv1(0) = relu(b1) != 0, so mask after BN+ReLU.
    row = r0 - 1 + lax.broadcasted_iota(jnp.int32, (TH + 2, Wp, 1), 0)
    colp = lax.broadcasted_iota(jnp.int32, (TH + 2, Wp, 1), 1)
    valid = (row >= 0) & (row < H) & (colp >= 1) & (colp <= W)
    y1 = jnp.where(valid, y1, 0.0).astype(jnp.bfloat16)      # bf16 from here on

    # ---- stage 2: 3x3 'same' conv as ONE K = 9*Cmid im2col matmul -----------
    # 9 shifted views of the (already zero-padded) y1 strip, concatenated
    # along the contraction dim; accumulation stays in registers (no VMEM
    # accumulator round trips).
    taps = [y1[ky:ky + TH, kx:kx + W, :]
            for ky in range(3) for kx in range(3)]           # each (TH, W, Cmid)
    slab = jnp.concatenate(taps, axis=-1).reshape(TH * W, 9 * Cmid)
    y2 = jnp.dot(slab, w2_ref[...], preferred_element_type=jnp.float32)
    y2 = jnp.maximum(y2 * s2_ref[...] + b2_ref[...], 0.0)
    o_ref[...] = y2.reshape(TH, W, Cg).astype(o_ref.dtype)


# ----------------------------------------------------------------------------
# Wrapper (layout glue at the PyTorch NCHW boundary)
# ----------------------------------------------------------------------------
def dense_unit_forward(x_nchw, params, *, strip_rows=16):
    w1, s1, b1, w2, s2, b2 = params
    x = jnp.transpose(x_nchw, (0, 2, 3, 1)).astype(jnp.float32)   # NCHW -> NHWC
    N, H, W, Cin = x.shape
    Cmid = w1.shape[1]
    Cg = w2.shape[-1]

    TH = min(strip_rows, H)                  # strip height
    S = pl.cdiv(H, TH)                       # cdiv grid; last strip handled by
    H_pad = S * TH                           # bottom zero padding + in-kernel mask

    # bf16 image, zero-padded: 1 halo row on top, (H_pad-H+1) rows at the
    # bottom, 1 halo column left/right.  XLA fuses this with the transpose.
    x_pad = jnp.pad(x.astype(jnp.bfloat16),
                    ((0, 0), (1, H_pad - H + 1), (1, 1), (0, 0)))

    w1b = w1.astype(jnp.bfloat16)                        # (Cin, Cmid)
    w2b = w2.reshape(9 * Cmid, Cg).astype(jnp.bfloat16)  # ky-major, kx, ci
    s1r = s1.reshape(1, Cmid).astype(jnp.float32)
    b1r = b1.reshape(1, Cmid).astype(jnp.float32)
    s2r = s2.reshape(1, Cg).astype(jnp.float32)
    b2r = b2.reshape(1, Cg).astype(jnp.float32)

    # Explicit VMEM budget: revisited full-image bf16 x block + double-buffered
    # output strips + weights, clamped to [32 MiB default, 64 MiB] so the
    # setting is valid on v5e/v6e (128 MiB) and v7x (64 MiB) alike.
    xblk = (H_pad + 2) * (W + 2) * Cin * 2
    oblk = TH * W * Cg * 4
    wbts = (w1b.size + w2b.size) * 2 + (Cmid + Cg) * 2 * 4
    need = 2 * xblk + 2 * oblk + 2 * wbts + (8 << 20)
    vmem_limit = int(min(max(need, 32 << 20), 64 << 20))

    kernel = functools.partial(dense_unit_kernel, H=H, TH=TH)
    y2_pad = pl.pallas_call(
        kernel,
        out_shape=jax.ShapeDtypeStruct((N, H_pad, W, Cg), jnp.float32),
        grid=(N, S),
        in_specs=[
            pl.BlockSpec((None, H_pad + 2, W + 2, Cin), lambda n, s: (n, 0, 0, 0)),
            pl.BlockSpec((Cin, Cmid), lambda n, s: (0, 0)),
            pl.BlockSpec((1, Cmid), lambda n, s: (0, 0)),
            pl.BlockSpec((1, Cmid), lambda n, s: (0, 0)),
            pl.BlockSpec((9 * Cmid, Cg), lambda n, s: (0, 0)),
            pl.BlockSpec((1, Cg), lambda n, s: (0, 0)),
            pl.BlockSpec((1, Cg), lambda n, s: (0, 0)),
        ],
        out_specs=pl.BlockSpec((None, TH, W, Cg), lambda n, s: (n, s, 0, 0)),
        compiler_params=pltpu.CompilerParams(
            # Batch axis only is "parallel": on v7x's 2 TCs this shards whole
            # images, so the revisited full-image x block is never duplicated
            # across cores; near-neutral on single-TC v5e/v6e.
            dimension_semantics=("parallel", "arbitrary"),
            vmem_limit_bytes=vmem_limit),
    )(x_pad, w1b, s1r, b1r, w2b, s2r, b2r)

    y2 = y2_pad[:, :H]
    # Dense concat with the passthrough channels (kernel output stays
    # lane-dense at channel offset 0; x is copied once here, outside).
    # TODO(synk): at the dense-*block* level, preallocate the final
    # (N,H,W,Cin_final) buffer and pass it via input_output_aliases so each
    # DenseUnit writes only its Cg new channels instead of re-copying x.
    out = jnp.concatenate([x, y2], axis=-1)
    return jnp.transpose(out, (0, 3, 1, 2))                  # NHWC -> NCHW


# ----------------------------------------------------------------------------
# Pure-JAX f32 reference (same math) for the sanity check
# ----------------------------------------------------------------------------
def ref_forward(x_nchw, params):
    w1, s1, b1, w2, s2, b2 = params
    x = jnp.transpose(x_nchw, (0, 2, 3, 1))
    y = jnp.einsum('nhwc,cd->nhwd', x, w1)
    y = jnp.maximum(y * s1 + b1, 0.0)
    y = lax.conv_general_dilated(
        y, w2, window_strides=(1, 1), padding='SAME',
        dimension_numbers=('NHWC', 'HWIO', 'NHWC'))
    y = jnp.maximum(y * s2 + b2, 0.0)
    out = jnp.concatenate([x, y], axis=-1)
    return jnp.transpose(out, (0, 3, 1, 2))


def make_params(key, cin, cmid, cg, eps=1e-5):
    ks = jax.random.split(key, 10)
    w1 = 0.1 * jax.random.normal(ks[0], (cin, cmid), jnp.float32)
    g1 = 1.0 + 0.1 * jax.random.normal(ks[1], (cmid,), jnp.float32)
    be1 = 0.1 * jax.random.normal(ks[2], (cmid,), jnp.float32)
    m1 = 0.1 * jax.random.normal(ks[3], (cmid,), jnp.float32)
    v1 = jax.random.uniform(ks[4], (cmid,), jnp.float32, 0.5, 1.5)
    w2 = 0.1 * jax.random.normal(ks[5], (3, 3, cmid, cg), jnp.float32)
    g2 = 1.0 + 0.1 * jax.random.normal(ks[6], (cg,), jnp.float32)
    be2 = 0.1 * jax.random.normal(ks[7], (cg,), jnp.float32)
    m2 = 0.1 * jax.random.normal(ks[8], (cg,), jnp.float32)
    v2 = jax.random.uniform(ks[9], (cg,), jnp.float32, 0.5, 1.5)
    s1 = g1 / jnp.sqrt(v1 + eps)
    b1 = be1 - m1 * s1
    s2 = g2 / jnp.sqrt(v2 + eps)
    b2 = be2 - m2 * s2
    return (w1, s1, b1, w2, s2, b2)


if __name__ == "__main__":
    # Small shapes consistent with the module (defaults 192/48 scaled down).
    N, Cin, H, W = 2, 8, 16, 16
    Cmid, Cg = 16, 8

    key = jax.random.PRNGKey(0)
    kx_, kp, kx2 = jax.random.split(key, 3)
    x = jax.random.normal(kx_, (N, Cin, H, W), jnp.float32)   # NCHW like PyTorch
    params = make_params(kp, Cin, Cmid, Cg)

    fwd = jax.jit(functools.partial(dense_unit_forward, strip_rows=8))
    out = jax.block_until_ready(fwd(x, params))
    assert out.shape == (N, Cin + Cg, H, W), out.shape
    ref = jax.block_until_ready(ref_forward(x, params))
    # bf16 matmul inputs (f32 accumulation) -> bf16-level tolerance
    np.testing.assert_allclose(np.asarray(out), np.asarray(ref),
                               rtol=2e-2, atol=2e-2)

    # H not divisible by the strip height -> exercises the cdiv grid plus
    # masked bottom-padding path.
    H2 = 10
    x2 = jax.random.normal(kx2, (N, Cin, H2, W), jnp.float32)
    out2 = jax.block_until_ready(
        jax.jit(functools.partial(dense_unit_forward, strip_rows=8))(x2, params))
    ref2 = jax.block_until_ready(ref_forward(x2, params))
    np.testing.assert_allclose(np.asarray(out2), np.asarray(ref2),
                               rtol=2e-2, atol=2e-2)

    print("KERNEL_OK")
</pallas_src>

<mosaic_0001>
module attributes {stable_mosaic.version = 11 : i64} {
  func.func @dense_unit_kernel(%arg0: i32, %arg1: i32, %arg2: memref<1x18x18x8xbf16, #tpu.memory_space<vmem>>, %arg3: memref<8x16xbf16, #tpu.memory_space<vmem>>, %arg4: memref<1x16xf32, #tpu.memory_space<vmem>>, %arg5: memref<1x16xf32, #tpu.memory_space<vmem>>, %arg6: memref<144x8xbf16, #tpu.memory_space<vmem>>, %arg7: memref<1x8xf32, #tpu.memory_space<vmem>>, %arg8: memref<1x8xf32, #tpu.memory_space<vmem>>, %arg9: memref<1x8x16x8xf32, #tpu.memory_space<vmem>>) attributes {dimension_semantics = [#tpu.dimension_semantics<parallel>, #tpu.dimension_semantics<arbitrary>], iteration_bounds = array<i64: 2, 2>, scalar_prefetch = 0 : i64, scratch_operands = 0 : i64, tpu.core_type = #tpu.core_type<tc>, window_params = [{transform_indices = @transform_0, window_bounds = array<i64: 1, 18, 18, 8>}, {pipeline_mode = #tpu.pipeline_mode<synchronous>, transform_indices = @transform_1, window_bounds = array<i64: 8, 16>}, {pipeline_mode = #tpu.pipeline_mode<synchronous>, transform_indices = @transform_2, window_bounds = array<i64: 1, 16>}, {pipeline_mode = #tpu.pipeline_mode<synchronous>, transform_indices = @transform_3, window_bounds = array<i64: 1, 16>}, {pipeline_mode = #tpu.pipeline_mode<synchronous>, transform_indices = @transform_4, window_bounds = array<i64: 144, 8>}, {pipeline_mode = #tpu.pipeline_mode<synchronous>, transform_indices = @transform_5, window_bounds = array<i64: 1, 8>}, {pipeline_mode = #tpu.pipeline_mode<synchronous>, transform_indices = @transform_6, window_bounds = array<i64: 1, 8>}, {transform_indices = @transform_7, window_bounds = array<i64: 1, 8, 16, 8>}]} {
    %c8_i32 = arith.constant 8 : i32
    %0 = arith.muli %arg1, %c8_i32 : i32
    %1 = tpu.assume_multiple %0, 8 : i32
    %c0 = arith.constant 0 : index
    %2 = arith.index_cast %1 : i32 to index
    %c0_0 = arith.constant 0 : index
    %c0_1 = arith.constant 0 : index
    %3 = vector.load %arg2[%c0, %2, %c0_0, %c0_1] : memref<1x18x18x8xbf16, #tpu.memory_space<vmem>>, vector<1x10x18x8xbf16>
    %4 = vector.shape_cast %3 : vector<1x10x18x8xbf16> to vector<10x18x8xbf16>
    %5 = vector.shape_cast %4 : vector<10x18x8xbf16> to vector<180x8xbf16>
    %c0_2 = arith.constant 0 : index
    %c0_3 = arith.constant 0 : index
    %6 = vector.load %arg3[%c0_2, %c0_3] : memref<8x16xbf16, #tpu.memory_space<vmem>>, vector<8x16xbf16>
    %cst = arith.constant dense<0.000000e+00> : vector<180x16xf32>
    %7 = tpu.matmul %5, %6, %cst {dimension_numbers = #tpu.dot_dimension_numbers<[1], [0], [0], [1], [0, 0, 1, 1], [], []>} : vector<180x8xbf16>, vector<8x16xbf16>, vector<180x16xf32> -> vector<180x16xf32>
    %c0_4 = arith.constant 0 : index
    %c0_5 = arith.constant 0 : index
    %8 = vector.load %arg4[%c0_4, %c0_5] : memref<1x16xf32, #tpu.memory_space<vmem>>, vector<1x16xf32>
    %9 = vector.broadcast %8 : vector<1x16xf32> to vector<180x16xf32>
    %10 = arith.mulf %7, %9 : vector<180x16xf32>
    %c0_6 = arith.constant 0 : index
    %c0_7 = arith.constant 0 : index
    %11 = vector.load %arg5[%c0_6, %c0_7] : memref<1x16xf32, #tpu.memory_space<vmem>>, vector<1x16xf32>
    %12 = vector.broadcast %11 : vector<1x16xf32> to vector<180x16xf32>
    %13 = arith.addf %10, %12 : vector<180x16xf32>
    %cst_8 = arith.constant 0.000000e+00 : f32
    %14 = vector.broadcast %cst_8 : f32 to vector<180x16xf32>
    %15 = arith.maximumf %13, %14 : vector<180x16xf32>
    %16 = vector.shape_cast %15 : vector<180x16xf32> to vector<10x18x16xf32>
    %c1_i32 = arith.constant 1 : i32
    %17 = arith.subi %1, %c1_i32 : i32
    %18 = tpu.iota {dimensions = array<i32: 0>} : vector<10x18x1xi32>
    %19 = vector.broadcast %17 : i32 to vector<10x18x1xi32>
    %20 = arith.addi %19, %18 : vector<10x18x1xi32>
    %21 = tpu.iota {dimensions = array<i32: 1>} : vector<10x18x1xi32>
    %c0_i32 = arith.constant 0 : i32
    %22 = vector.broadcast %c0_i32 : i32 to vector<10x18x1xi32>
    %23 = arith.cmpi sge, %20, %22 : vector<10x18x1xi32>
    %c16_i32 = arith.constant 16 : i32
    %24 = vector.broadcast %c16_i32 : i32 to vector<10x18x1xi32>
    %25 = arith.cmpi slt, %20, %24 : vector<10x18x1xi32>
    %26 = arith.andi %23, %25 : vector<10x18x1xi1>
    %c1_i32_9 = arith.constant 1 : i32
    %27 = vector.broadcast %c1_i32_9 : i32 to vector<10x18x1xi32>
    %28 = arith.cmpi sge, %21, %27 : vector<10x18x1xi32>
    %29 = arith.andi %26, %28 : vector<10x18x1xi1>
    %c16_i32_10 = arith.constant 16 : i32
    %30 = vector.broadcast %c16_i32_10 : i32 to vector<10x18x1xi32>
    %31 = arith.cmpi sle, %21, %30 : vector<10x18x1xi32>
    %32 = arith.andi %29, %31 : vector<10x18x1xi1>
    %cst_11 = arith.constant 0.000000e+00 : f32
    %33 = vector.shape_cast %32 : vector<10x18x1xi1> to vector<10x18x1xi1>
    %34 = vector.broadcast %33 : vector<10x18x1xi1> to vector<10x18x16xi1>
    %35 = vector.broadcast %cst_11 : f32 to vector<10x18x16xf32>
    %36 = arith.select %34, %16, %35 : vector<10x18x16xi1>, vector<10x18x16xf32>
    %37 = arith.truncf %36 : vector<10x18x16xf32> to vector<10x18x16xbf16>
    %38 = vector.extract_strided_slice %37 {offsets = [0, 0, 0], sizes = [8, 16, 16], strides = [1, 1, 1]} : vector<10x18x16xbf16> to vector<8x16x16xbf16>
    %39 = vector.extract_strided_slice %37 {offsets = [0, 1, 0], sizes = [8, 16, 16], strides = [1, 1, 1]} : vector<10x18x16xbf16> to vector<8x16x16xbf16>
    %40 = vector.extract_strided_slice %37 {offsets = [0, 2, 0], sizes = [8, 16, 16], strides = [1, 1, 1]} : vector<10x18x16xbf16> to vector<8x16x16xbf16>
    %41 = vector.extract_strided_slice %37 {offsets = [1, 0, 0], sizes = [8, 16, 16], strides = [1, 1, 1]} : vector<10x18x16xbf16> to vector<8x16x16xbf16>
    %42 = vector.extract_strided_slice %37 {offsets = [1, 1, 0], sizes = [8, 16, 16], strides = [1, 1, 1]} : vector<10x18x16xbf16> to vector<8x16x16xbf16>
    %43 = vector.extract_strided_slice %37 {offsets = [1, 2, 0], sizes = [8, 16, 16], strides = [1, 1, 1]} : vector<10x18x16xbf16> to vector<8x16x16xbf16>
    %44 = vector.extract_strided_slice %37 {offsets = [2, 0, 0], sizes = [8, 16, 16], strides = [1, 1, 1]} : vector<10x18x16xbf16> to vector<8x16x16xbf16>
    %45 = vector.extract_strided_slice %37 {offsets = [2, 1, 0], sizes = [8, 16, 16], strides = [1, 1, 1]} : vector<10x18x16xbf16> to vector<8x16x16xbf16>
    %46 = vector.extract_strided_slice %37 {offsets = [2, 2, 0], sizes = [8, 16, 16], strides = [1, 1, 1]} : vector<10x18x16xbf16> to vector<8x16x16xbf16>
    %47 = tpu.concatenate %38, %39, %40, %41, %42, %43, %44, %45, %46 in 2 : vector<8x16x16xbf16>, vector<8x16x16xbf16>, vector<8x16x16xbf16>, vector<8x16x16xbf16>, vector<8x16x16xbf16>, vector<8x16x16xbf16>, vector<8x16x16xbf16>, vector<8x16x16xbf16>, vector<8x16x16xbf16> -> vector<8x16x144xbf16>
    %48 = vector.shape_cast %47 : vector<8x16x144xbf16> to vector<128x144xbf16>
    %c0_12 = arith.constant 0 : index
    %c0_13 = arith.constant 0 : index
    %49 = vector.load %arg6[%c0_12, %c0_13] : memref<144x8xbf16, #tpu.memory_space<vmem>>, vector<144x8xbf16>
    %cst_14 = arith.constant dense<0.000000e+00> : vector<128x8xf32>
    %50 = tpu.matmul %48, %49, %cst_14 {dimension_numbers = #tpu.dot_dimension_numbers<[1], [0], [0], [1], [0, 0, 1, 1], [], []>} : vector<128x144xbf16>, vector<144x8xbf16>, vector<128x8xf32> -> vector<128x8xf32>
    %c0_15 = arith.constant 0 : index
    %c0_16 = arith.constant 0 : index
    %51 = vector.load %arg7[%c0_15, %c0_16] : memref<1x8xf32, #tpu.memory_space<vmem>>, vector<1x8xf32>
    %52 = vector.broadcast %51 : vector<1x8xf32> to vector<128x8xf32>
    %53 = arith.mulf %50, %52 : vector<128x8xf32>
    %c0_17 = arith.constant 0 : index
    %c0_18 = arith.constant 0 : index
    %54 = vector.load %arg8[%c0_17, %c0_18] : memref<1x8xf32, #tpu.memory_space<vmem>>, vector<1x8xf32>
    %55 = vector.broadcast %54 : vector<1x8xf32> to vector<128x8xf32>
    %56 = arith.addf %53, %55 : vector<128x8xf32>
    %cst_19 = arith.constant 0.000000e+00 : f32
    %57 = vector.broadcast %cst_19 : f32 to vector<128x8xf32>
    %58 = arith.maximumf %56, %57 : vector<128x8xf32>
    %59 = vector.shape_cast %58 : vector<128x8xf32> to vector<8x16x8xf32>
    %c0_20 = arith.constant 0 : index
    %c0_21 = arith.constant 0 : index
    %c0_22 = arith.constant 0 : index
    %c0_23 = arith.constant 0 : index
    %60 = vector.load %arg9[%c0_20, %c0_21, %c0_22, %c0_23] : memref<1x8x16x8xf32, #tpu.memory_space<vmem>>, vector<1x8x16x8xf32>
    %61 = vector.shape_cast %60 : vector<1x8x16x8xf32> to vector<8x16x8xf32>
    %62 = vector.shape_cast %59 : vector<8x16x8xf32> to vector<1x8x16x8xf32>
    tpu.vector_store %arg9[%c0_20, %c0_21, %c0_22, %c0_23], %62 {strides = array<i32>} : memref<1x8x16x8xf32, #tpu.memory_space<vmem>>, vector<1x8x16x8xf32>,
    return
  }
  func.func @transform_0(%arg0: i32, %arg1: i32) -> (i32, i32, i32, i32) {
    %c0_i32 = arith.constant 0 : i32
    %c0_i32_0 = arith.constant 0 : i32
    %c0_i32_1 = arith.constant 0 : i32
    %c0_i32_2 = arith.constant 0 : i32
    return %arg0, %c0_i32, %c0_i32_0, %c0_i32_1 : i32, i32, i32, i32
  }
  func.func @transform_1(%arg0: i32, %arg1: i32) -> (i32, i32) {
    %c0_i32 = arith.constant 0 : i32
    %c0_i32_0 = arith.constant 0 : i32
    %c0_i32_1 = arith.constant 0 : i32
    return %c0_i32, %c0_i32_0 : i32, i32
  }
  func.func @transform_2(%arg0: i32, %arg1: i32) -> (i32, i32) {
    %c0_i32 = arith.constant 0 : i32
    %c0_i32_0 = arith.constant 0 : i32
    %c0_i32_1 = arith.constant 0 : i32
    return %c0_i32, %c0_i32_0 : i32, i32
  }
  func.func @transform_3(%arg0: i32, %arg1: i32) -> (i32, i32) {
    %c0_i32 = arith.constant 0 : i32
    %c0_i32_0 = arith.constant 0 : i32
    %c0_i32_1 = arith.constant 0 : i32
    return %c0_i32, %c0_i32_0 : i32, i32
  }
  func.func @transform_4(%arg0: i32, %arg1: i32) -> (i32, i32) {
    %c0_i32 = arith.constant 0 : i32
    %c0_i32_0 = arith.constant 0 : i32
    %c0_i32_1 = arith.constant 0 : i32
    return %c0_i32, %c0_i32_0 : i32, i32
  }
  func.func @transform_5(%arg0: i32, %arg1: i32) -> (i32, i32) {
    %c0_i32 = arith.constant 0 : i32
    %c0_i32_0 = arith.constant 0 : i32
    %c0_i32_1 = arith.constant 0 : i32
    return %c0_i32, %c0_i32_0 : i32, i32
  }
  func.func @transform_6(%arg0: i32, %arg1: i32) -> (i32, i32) {
    %c0_i32 = arith.constant 0 : i32
    %c0_i32_0 = arith.constant 0 : i32
    %c0_i32_1 = arith.constant 0 : i32
    return %c0_i32, %c0_i32_0 : i32, i32
  }
  func.func @transform_7(%arg0: i32, %arg1: i32) -> (i32, i32, i32, i32) {
    %c0_i32 = arith.constant 0 : i32
    %c0_i32_0 = arith.constant 0 : i32
    %c0_i32_1 = arith.constant 0 : i32
    return %arg0, %arg1, %c0_i32, %c0_i32_0 : i32, i32, i32, i32
  }
}

</mosaic_0001>

<bundles_post_ra>
// kernel: dense_unit_forward.1
= control target key start
LH: loop header
LB: loop body
LE: loop exit
PB: predicated region body
PF: predicated region fallthrough
CT: control target
= control target key end

     0   :  { %s3934_s24 = smov 0   ;;  %s3936_s25 = smov 0   ;;  %s5191_s0 = inlined_call_operand.vmem [shape: bf16[2,18,18,8], index: 0, kind: input, shape index: {}]   ;;  %s5192_s1 = inlined_call_operand.vmem [shape: bf16[8,16], index: 1, kind: input, shape index: {}]   ;;  %s5193_s2 = inlined_call_operand.vmem [shape: f32[1,16], index: 2, kind: input, shape index: {}]   ;;  %s5194_s3 = inlined_call_operand.vmem [shape: f32[1,16], index: 3, kind: input, shape index: {}]   ;;  %s5195_s4 = inlined_call_operand.vmem [shape: bf16[144,8], index: 4, kind: input, shape index: {}]   ;;  %s5196_s5 = inlined_call_operand.vmem [shape: f32[1,8], index: 5, kind: input, shape index: {}]   ;;  %s5197_s6 = inlined_call_operand.vmem [shape: f32[1,8], index: 6, kind: input, shape index: {}]   ;;  %s5198_s7 = inlined_call_operand.vmem [shape: f32[2,16,16,8], index: 7, kind: output, shape index: {}]  }
   0x1   :  { %s3938_s26 = smov 0   ;;  %s3940_s27 = smov 0  }
   0x2   :  { %s3942_s28 = smov 0  }
   0x3 LB: > { %s26_s29 = sadd.s32 1, %s3874_s26  ;;  %s29_s30 = sadd.s32 1, %s3878_s27  ;;  %s3882_s28 = sphi %s3942_s28, %s17_s28   ;;  %s3878_s27 = sphi %s3940_s27, %s5237_s27   ;;  %s3874_s26 = sphi %s3938_s26, %s5236_s26   ;;  %s3870_s25 = sphi %s3936_s25, %s5235_s25   ;;  %s3866_s24 = sphi %s3934_s24, %s5234_s24  }
   0x4   : > { %p27_p0 = scmp.ge.s32.totalorder %s26_s29, 2  ;;  %p3640_p1 = scmp.ge.s32.totalorder %s3882_s28, 1 }
   0x5   : > { %p251_p2 = scmp.lt.s32.totalorder %s3882_s28, 5 }
   0x6   : > { %s5239_s29 = smov (%p27_p0, %s26_s29), 0  ;;  %s5241_s30 = smov (!%p27_p0, %s29_s30), %s3878_s27 }
   0x7   : > { %p252_p3 = pnand %p3640_p1, %p251_p2  ;;  %p31_p4 = scmp.ge.s32.totalorder %s5241_s30, 2 }
   0x8   : > { %p288_p5 = scmp.lt.s32.totalorder (!%p252_p3), %s3870_s25, 1  ;;  %s3725_s10 = smul.u32 (!%p252_p3), 96, %s3866_s24 }
   0x9   : > { %s5243_s30 = smov (%p31_p4, %s5241_s30), 0  ;;  %255 = sbr.rel (%p252_p3) target bundleno = 732 (0x2dc), region = 48 }
   0xa   : > { %s4159_s20 = sshll.u32 (!%p252_p3), %s3866_s24, 3  ;;  %s3886_s22 = smov (!%p252_p3), 48  }
   0xb   : > { %s3703_s21 = sadd.s32 (!%p252_p3), 4294967295, %s4159_s20  ;;  %s3887_s23 = smov (!%p252_p3), 32  }
   0xc   : > { %s3888_s24 = smov (!%p252_p3), 96   ;;  %s3889_s8 = smov (!%p252_p3), 80  }
   0xd   : > { %s3890_s9 = smov (!%p252_p3), 16   ;;  %p296_p6 = scmp.lt.s32.totalorder (!%p252_p3), %s4159_s20, 15 }
   0xe   : > { %v989_v0 = vld [vmem:[%s5192_s1] sm:$0xf]  ;;  %vm1581_vm0 = vcmask 1043456   ;;  %v380_v1 = vlaneseq  ;;  %s5245_s25 = smov (!%p288_p5, %s3870_s25), 1  ;;  %v3884_v3 = vmov 1966171168  }
   0xf   : > { %3783 = vmatprep.subr.msk.bf16.mxu0 %vm1581_vm0, %v989_v0  ;;  %v1583_v2 = vsel %vm1581_vm0, %v989_v0, 0  ;;  %v378_v4 = vunpack.c.l.s4 %v3884_v3  ;;  %s3784_s11 = smul.u32 216, %s5245_s25  ;;  %vm1544_vm1 = vcmask 64512   ;;  %vm2991_vm0 = vcmask 1046528   ;;  %s5247_s20 = smov (!%p296_p6, %s4159_s20), 15 }
  0x10   : > { %3740 = vmatpush3.bf16.msra.mxu0 %v1583_v2  ;;  %v3972_v5 = vshrl.u32 %v380_v1, 7 }
  0x11   : > { %v379_v6 = vunpack.c.0.s8 %v378_v4  ;;  %s292_s14 = scalar_lea.vmem %s5191_s0, %s3784_s11 }
  0x12   : > { %s3981_s15 = scalar_lea.vmem %s292_s14, %s3725_s10  ;;  %vm2246_vm4 = vcmp.ge.s32.totalorder %v3972_v5, 1  ;;  %s3891_s10 = smov 64  }
  0x13   : > { %v3979_v7 = vsub.s32 %v379_v6, %v3972_v5  ;;  %v3649_v8 = vld.sshfl [vmem:[%s3981_s15] sm:$0x33 pattern:$0x75316420] }
  0x14   : > { %v3650_v9 = vld.sshfl [vmem:[%s3981_s15 + $0x4] sm:$0x33 pattern:$0x75316420]  ;;  %v376_v10 = vcombine.high %v3649_v8, %v3649_v8 }
  0x15   : > { %v383_v11 = vrot.slane %v3649_v8, %v3979_v7  ;;  %v400_v12 = vcombine.high %v3650_v9, %v3650_v9  ;;  %v407_v13 = vrot.slane %v3650_v9, %v3979_v7  ;;  %v3651_v14 = vld.sshfl [vmem:[%s3981_s15 + $0x8] sm:$0x1 pattern:$0x75316420] }
  0x16   : > { %v390_v15 = vrot.slane %v376_v10, %v3979_v7  ;;  %v3652_v16 = vld.sshfl [vmem:[%s3981_s15 + $0xc] sm:$0x33 pattern:$0x75316420]  ;;  %v430_v19 = vrot.slane %v3651_v14, %v3979_v7 }
  0x17   : > { %v414_v17 = vrot.slane %v400_v12, %v3979_v7  ;;  %v3653_v18 = vld.sshfl [vmem:[%s3981_s15 + $0x10] sm:$0x33 pattern:$0x75316420]  ;;  %v438_v20 = vcombine.high %v3652_v16, %v3652_v16  ;;  %v445_v21 = vrot.slane %v3652_v16, %v3979_v7 }
  0x18   : > { %v990_v22 = vcombine.low %v383_v11, %v390_v15  ;;  %v3679_v23 = vcombine.high %v383_v11, %v390_v15  ;;  %v462_v24 = vcombine.high %v3653_v18, %v3653_v18  ;;  %v469_v25 = vrot.slane %v3653_v18, %v3979_v7  ;;  %v3654_v34 = vld.sshfl [vmem:[%s3981_s15 + $0x14] sm:$0x1 pattern:$0x75316420] }
  0x19   : > { %v992_v26 = vcombine.low %v407_v13, %v414_v17  ;;  %v3680_v27 = vcombine.high %v407_v13, %v414_v17  ;;  %v452_v28 = vrot.slane %v438_v20, %v3979_v7  ;;  %v453_v29 = vcombine.high %v445_v21, %v445_v21  ;;  %v3655_v39 = vld.sshfl [vmem:[%s3981_s15 + $0x18] sm:$0x33 pattern:$0x75316420] }
  0x1a   : > { %v1000_v30 = vrot.slane %v990_v22, %v3979_v7  ;;  %v1007_v31 = vrot.slane %v3679_v23, %v3979_v7  ;;  %v476_v32 = vrot.slane %v462_v24, %v3979_v7  ;;  %v477_v33 = vcombine.high %v469_v25, %v469_v25  ;;  %v3656_v43 = vld.sshfl [vmem:[%s3981_s15 + $0x1c] sm:$0x33 pattern:$0x75316420] }
  0x1b   : > { %v1014_v35 = vrot.slane %v992_v26, %v3979_v7  ;;  %v1021_v36 = vrot.slane %v3680_v27, %v3979_v7  ;;  %v454_v37 = vcombine.high %v452_v28, %v452_v28  ;;  %v1039_v38 = vcombine.low %v430_v19, %v445_v21  ;;  %v3657_v53 = vld.sshfl [vmem:[%s3981_s15 + $0x20] sm:$0x1 pattern:$0x75316420] }
  0x1c   : > { %v1022_v40 = vcombine.low %v1000_v30, %v1007_v31  ;;  %v1040_v41 = vcombine.low %v452_v28, %v453_v29  ;;  %v1042_v42 = vcombine.low %v476_v32, %v477_v33  ;;  %v478_v44 = vcombine.high %v476_v32, %v476_v32  ;;  %v3658_v62 = vld.sshfl [vmem:[%s3981_s15 + $0x24] sm:$0x33 pattern:$0x75316420] }
  0x1d   : > { %v1023_v45 = vcombine.low %v1014_v35, %v1021_v36  ;;  %v1041_v46 = vcombine.low %v454_v37, %v469_v25  ;;  %v1049_v47 = vrot.slane %v1039_v38, %v3979_v7  ;;  %v492_v48 = vrot.slane %v3654_v34, %v3979_v7  ;;  %v3659_v2 = vld.sshfl [vmem:[%s3981_s15 + $0x28] sm:$0x33 pattern:$0x75316420] }
  0x1e   : > { %v1030_v49 = vrot.slane %v1022_v40, %v3979_v7  ;;  %v1056_v50 = vrot.slane %v1040_v41, %v3979_v7  ;;  %v1070_v51 = vrot.slane %v1042_v42, %v3979_v7  ;;  %v500_v52 = vcombine.high %v3655_v39, %v3655_v39  ;;  %v3660_v22 = vld.sshfl [vmem:[%s3981_s15 + $0x2c] sm:$0x1 pattern:$0x75316420] }
  0x1f   : > { %v1037_v54 = vrot.slane %v1023_v45, %v3979_v7  ;;  %v1063_v55 = vrot.slane %v1041_v46, %v3979_v7  ;;  %v507_v56 = vrot.slane %v3655_v39, %v3979_v7  ;;  %v524_v57 = vcombine.high %v3656_v43, %v3656_v43  ;;  %v3661_v26 = vld.sshfl [vmem:[%s3981_s15 + $0x30] sm:$0x33 pattern:$0x75316420] }
  0x20   : > { %v1071_v58 = vcombine.low %v1049_v47, %v1056_v50  ;;  %v514_v59 = vrot.slane %v500_v52, %v3979_v7  ;;  %v531_v60 = vrot.slane %v3656_v43, %v3979_v7  ;;  %v1088_v61 = vcombine.low %v478_v44, %v492_v48  ;;  %v3662_v36 = vld.sshfl [vmem:[%s3981_s15 + $0x34] sm:$0x33 pattern:$0x75316420] }
  0x21   : > { %v1038_v63 = vcombine.low %v1030_v49, %v1037_v54  ;;  %v1072_v0 = vcombine.low %v1063_v55, %v1070_v51  ;;  %v538_v1 = vrot.slane %v524_v57, %v3979_v7  ;;  %v554_v3 = vrot.slane %v3657_v53, %v3979_v7  ;;  %v3663_v45 = vld.sshfl [vmem:[%s3981_s15 + $0x38] sm:$0x1 pattern:$0x75316420] }
  0x22   : > { %v1079_v4 = vrot.slane %v1071_v58, %v3979_v7  ;;  %v1089_v6 = vcombine.low %v507_v56, %v514_v59  ;;  %v3681_v8 = vcombine.high %v507_v56, %v514_v59  ;;  %v1098_v9 = vrot.slane %v1088_v61, %v3979_v7  ;;  %v3664_v49 = vld.sshfl [vmem:[%s3981_s15 + $0x3c] sm:$0x33 pattern:$0x75316420] }
  0x23   : > { %3741 = vmatprep.mubr.msk.bf16.mxu0 %vm1544_vm1, %v1038_v63  ;;  %v1086_v10 = vrot.slane %v1072_v0, %v3979_v7  ;;  %v1091_v11 = vcombine.low %v531_v60, %v538_v1  ;;  %v562_v12 = vcombine.high %v3658_v62, %v3658_v62  ;;  %v569_v13 = vrot.slane %v3658_v62, %v3979_v7 }
  0x24   : > { %v1105_v14 = vrot.slane %v1089_v6, %v3979_v7  ;;  %v1112_v15 = vrot.slane %v3681_v8, %v3979_v7  ;;  %v593_v16 = vrot.slane %v3659_v2, %v3979_v7  ;;  %v3682_v17 = vcombine.high %v531_v60, %v538_v1 }
  0x25   : > { %v1087_v18 = vcombine.low %v1079_v4, %v1086_v10  ;;  %v1119_v19 = vrot.slane %v1091_v11, %v3979_v7  ;;  %v576_v20 = vrot.slane %v562_v12, %v3979_v7  ;;  %v577_v21 = vcombine.high %v569_v13, %v569_v13  ;;  %v3666_v10 = vld.sshfl [vmem:[%s3981_s15 + $0x44] sm:$0x1 pattern:$0x75316420] }
  0x26   : > { %v1120_v23 = vcombine.low %v1098_v9, %v1105_v14  ;;  %v1138_v24 = vcombine.low %v554_v3, %v569_v13  ;;  %v1147_v25 = vrot.slane %v3682_v17, %v3979_v7  ;;  %v586_v27 = vcombine.high %v3659_v2, %v3659_v2  ;;  %v3665_v3 = vld.sshfl [vmem:[%s3981_s15 + $0x40] sm:$0x33 pattern:$0x75316420] }
  0x27   : > { %3742 = vmatmul.mubr.msk.bf16.vlgmr.msra.gmra.mxu0 %vm1544_vm1, %v1087_v18  ;;  %v1121_v28 = vcombine.low %v1112_v15, %v1119_v19  ;;  %v578_v29 = vcombine.high %v576_v20, %v576_v20  ;;  %v1139_v30 = vcombine.low %v576_v20, %v577_v21  ;;  %v601_v31 = vcombine.high %v593_v16, %v593_v16  ;;  %v3667_v15 = vld.sshfl [vmem:[%s3981_s15 + $0x48] sm:$0x33 pattern:$0x75316420] }
  0x28   : > { %v1128_v32 = vrot.slane %v1120_v23, %v3979_v7  ;;  %v1154_v33 = vrot.slane %v1138_v24, %v3979_v7  ;;  %v600_v34 = vrot.slane %v586_v27, %v3979_v7  ;;  %v616_v35 = vrot.slane %v3660_v22, %v3979_v7 }
  0x29   : > { %v1135_v37 = vrot.slane %v1121_v28, %v3979_v7  ;;  %v1140_v38 = vcombine.low %v578_v29, %v593_v16  ;;  %v1161_v39 = vrot.slane %v1139_v30, %v3979_v7  ;;  %v624_v40 = vcombine.high %v3661_v26, %v3661_v26  ;;  %v3668_v28 = vld.sshfl [vmem:[%s3981_s15 + $0x4c] sm:$0x33 pattern:$0x75316420] }
  0x2a   : > { %v1169_v41 = vcombine.low %v1147_v25, %v1154_v33  ;;  %v602_v42 = vcombine.high %v600_v34, %v600_v34  ;;  %v631_v43 = vrot.slane %v3661_v26, %v3979_v7  ;;  %v1186_v44 = vcombine.low %v600_v34, %v601_v31  ;;  %v3669_v33 = vld.sshfl [vmem:[%s3981_s15 + $0x50] sm:$0x1 pattern:$0x75316420] }
  0x2b   : > { %v1136_v46 = vcombine.low %v1128_v32, %v1135_v37  ;;  %v1168_v47 = vrot.slane %v1140_v38, %v3979_v7  ;;  %v638_v48 = vrot.slane %v624_v40, %v3979_v7  ;;  %v648_v50 = vcombine.high %v3662_v36, %v3662_v36  ;;  %v3670_v38 = vld.sshfl [vmem:[%s3981_s15 + $0x54] sm:$0x33 pattern:$0x75316420] }
  0x2c   : > { %v1177_v51 = vrot.slane %v1169_v41, %v3979_v7  ;;  %v1187_v52 = vcombine.low %v602_v42, %v616_v35  ;;  %v1196_v53 = vrot.slane %v1186_v44, %v3979_v7  ;;  %v655_v54 = vrot.slane %v3662_v36, %v3979_v7 }
  0x2d   : > { %3745 = vmatprep.mubr.msk.bf16.mxu0 %vm1544_vm1, %v1136_v46  ;;  %v1170_v55 = vcombine.low %v1161_v39, %v1168_v47  ;;  %v1188_v56 = vcombine.low %v631_v43, %v638_v48  ;;  %v3683_v57 = vcombine.high %v631_v43, %v638_v48  ;;  %v662_v58 = vrot.slane %v648_v50, %v3979_v7 }
  0x2e   : > { %v1203_v59 = vrot.slane %v1187_v52, %v3979_v7  ;;  %v678_v60 = vrot.slane %v3663_v45, %v3979_v7  ;;  %v686_v61 = vcombine.high %v3664_v49, %v3664_v49  ;;  %v693_v62 = vrot.slane %v3664_v49, %v3979_v7 }
  0x2f   : > { %v1184_v63 = vrot.slane %v1170_v55, %v3979_v7  ;;  %v1210_v0 = vrot.slane %v1188_v56, %v3979_v7  ;;  %v1217_v1 = vrot.slane %v3683_v57, %v3979_v7  ;;  %v1235_v2 = vcombine.low %v655_v54, %v662_v58 }
  0x30   : > { %v1218_v4 = vcombine.low %v1196_v53, %v1203_v59  ;;  %v700_v6 = vrot.slane %v686_v61, %v3979_v7  ;;  %v701_v8 = vcombine.high %v693_v62, %v693_v62  ;;  %v3684_v9 = vcombine.high %v655_v54, %v662_v58  ;;  %v3671_v59 = vld.sshfl [vmem:[%s3981_s15 + $0x58] sm:$0x33 pattern:$0x75316420] }
  0x31   : > { %v1185_v11 = vcombine.low %v1177_v51, %v1184_v63  ;;  %v1219_v12 = vcombine.low %v1210_v0, %v1217_v1  ;;  %v1237_v13 = vcombine.low %v678_v60, %v693_v62  ;;  %v1245_v14 = vrot.slane %v1235_v2, %v3979_v7  ;;  %v3672_v62 = vld.sshfl [vmem:[%s3981_s15 + $0x5c] sm:$0x1 pattern:$0x75316420] }
  0x32   : > { %v1226_v16 = vrot.slane %v1218_v4, %v3979_v7  ;;  %v1238_v17 = vcombine.low %v700_v6, %v701_v8  ;;  %v1252_v18 = vrot.slane %v3684_v9, %v3979_v7  ;;  %v702_v19 = vcombine.high %v700_v6, %v700_v6 }
  0x33   : > { %3746 = vmatmul.mubr.msk.bf16.gmra.mxu0 %vm1544_vm1, %v1185_v11  ;;  %v1233_v20 = vrot.slane %v1219_v12, %v3979_v7  ;;  %v1259_v21 = vrot.slane %v1237_v13, %v3979_v7  ;;  %v710_v22 = vcombine.high %v3665_v3, %v3665_v3  ;;  %v717_v23 = vrot.slane %v3665_v3, %v3979_v7  ;;  %v3673_v11 = vld.sshfl [vmem:[%s3981_s15 + $0x60] sm:$0x33 pattern:$0x75316420] }
  0x34   : > { %v1266_v24 = vrot.slane %v1238_v17, %v3979_v7  ;;  %v1267_v25 = vcombine.low %v1245_v14, %v1252_v18  ;;  %v740_v26 = vrot.slane %v3666_v10, %v3979_v7  ;;  %v748_v27 = vcombine.high %v3667_v15, %v3667_v15 }
  0x35   : > { %v1234_v29 = vcombine.low %v1226_v16, %v1233_v20  ;;  %v724_v30 = vrot.slane %v710_v22, %v3979_v7  ;;  %v725_v31 = vcombine.high %v717_v23, %v717_v23  ;;  %v755_v32 = vrot.slane %v3667_v15, %v3979_v7  ;;  %v3674_v20 = vld.sshfl [vmem:[%s3981_s15 + $0x64] sm:$0x33 pattern:$0x75316420] }
  0x36   : > { %v1268_v34 = vcombine.low %v1259_v21, %v1266_v24  ;;  %v1275_v35 = vrot.slane %v1267_v25, %v3979_v7  ;;  %v762_v36 = vrot.slane %v748_v27, %v3979_v7  ;;  %v1284_v37 = vcombine.low %v702_v19, %v717_v23 }
  0x37   : > { %3749 = vmatprep.mubr.msk.bf16.mxu0 %vm1544_vm1, %v1234_v29  ;;  %v726_v39 = vcombine.high %v724_v30, %v724_v30  ;;  %v1285_v40 = vcombine.low %v724_v30, %v725_v31  ;;  %v772_v41 = vcombine.high %v3668_v28, %v3668_v28  ;;  %v779_v42 = vrot.slane %v3668_v28, %v3979_v7  ;;  %v3675_v29 = vld.sshfl [vmem:[%s3981_s15 + $0x68] sm:$0x1 pattern:$0x75316420] }
  0x38   : > { %v1282_v43 = vrot.slane %v1268_v34, %v3979_v7  ;;  %v1287_v44 = vcombine.low %v755_v32, %v762_v36  ;;  %v1294_v45 = vrot.slane %v1284_v37, %v3979_v7  ;;  %v802_v46 = vrot.slane %v3669_v33, %v3979_v7  ;;  %v3676_v34 = vld.sshfl [vmem:[%s3981_s15 + $0x6c] sm:$0x33 pattern:$0x75316420] }
  0x39   : > { %v1286_v47 = vcombine.low %v726_v39, %v740_v26  ;;  %v1301_v48 = vrot.slane %v1285_v40, %v3979_v7  ;;  %v786_v49 = vrot.slane %v772_v41, %v3979_v7  ;;  %v817_v50 = vrot.slane %v3670_v38, %v3979_v7 }
  0x3a   : > { %v1283_v51 = vcombine.low %v1275_v35, %v1282_v43  ;;  %v1315_v52 = vrot.slane %v1287_v44, %v3979_v7  ;;  %v3685_v53 = vcombine.high %v755_v32, %v762_v36  ;;  %v810_v54 = vcombine.high %v3670_v38, %v3670_v38 }
  0x3b   : > { %v1308_v55 = vrot.slane %v1286_v47, %v3979_v7  ;;  %v1316_v56 = vcombine.low %v1294_v45, %v1301_v48  ;;  %v1334_v57 = vcombine.low %v779_v42, %v786_v49  ;;  %v3686_v58 = vcombine.high %v779_v42, %v786_v49  ;;  %v3677_v42 = vld.sshfl [vmem:[%s3981_s15 + $0x70] sm:$0x33 pattern:$0x75316420] }
  0x3c   : > { %3750 = vmatmul.mubr.msk.bf16.gmra.mxu0 %vm1544_vm1, %v1283_v51  ;;  %v1336_v60 = vcombine.low %v802_v46, %v817_v50  ;;  %v1343_v61 = vrot.slane %v3685_v53, %v3979_v7  ;;  %v824_v63 = vrot.slane %v810_v54, %v3979_v7  ;;  %v825_v0 = vcombine.high %v817_v50, %v817_v50 }
  0x3d   : > { %v1317_v1 = vcombine.low %v1308_v55, %v1315_v52  ;;  %v1324_v2 = vrot.slane %v1316_v56, %v3979_v7  ;;  %v1350_v3 = vrot.slane %v1334_v57, %v3979_v7  ;;  %v1357_v4 = vrot.slane %v3686_v58, %v3979_v7 }
  0x3e   : > { %v1364_v6 = vrot.slane %v1336_v60, %v3979_v7  ;;  %v826_v8 = vcombine.high %v824_v63, %v824_v63  ;;  %v834_v9 = vcombine.high %v3671_v59, %v3671_v59  ;;  %v841_v10 = vrot.slane %v3671_v59, %v3979_v7 }
  0x3f   : > { %v1331_v12 = vrot.slane %v1317_v1, %v3979_v7  ;;  %v1365_v13 = vcombine.low %v1343_v61, %v1350_v3  ;;  %v864_v14 = vrot.slane %v3672_v62, %v3979_v7  ;;  %v1382_v15 = vcombine.low %v824_v63, %v825_v0  ;;  %v3678_v0 = vld.sshfl [vmem:[%s3981_s15 + $0x74] sm:$0x1 pattern:$0x75316420]  ;;  %s3893_s15 = smov 112  }
  0x40   : > { %v1366_v16 = vcombine.low %v1357_v4, %v1364_v6  ;;  %v848_v17 = vrot.slane %v834_v9, %v3979_v7  ;;  %v849_v18 = vcombine.high %v841_v10, %v841_v10  ;;  %v1383_v19 = vcombine.low %v826_v8, %v841_v10 }
  0x41   : > { %v1332_v21 = vcombine.low %v1324_v2, %v1331_v12  ;;  %v1373_v22 = vrot.slane %v1365_v13, %v3979_v7  ;;  %v1392_v23 = vrot.slane %v1382_v15, %v3979_v7  ;;  %v872_v24 = vcombine.high %v3673_v11, %v3673_v11 }
  0x42   : > { %v1380_v25 = vrot.slane %v1366_v16, %v3979_v7  ;;  %v850_v26 = vcombine.high %v848_v17, %v848_v17  ;;  %v1384_v27 = vcombine.low %v848_v17, %v849_v18  ;;  %v1399_v28 = vrot.slane %v1383_v19, %v3979_v7 }
  0x43   : > { %3753 = vmatprep.mubr.msk.bf16.mxu0 %vm1544_vm1, %v1332_v21  ;;  %v879_v30 = vrot.slane %v3673_v11, %v3979_v7  ;;  %v886_v31 = vrot.slane %v872_v24, %v3979_v7  ;;  %v896_v32 = vcombine.high %v3674_v20, %v3674_v20  ;;  %v903_v33 = vrot.slane %v3674_v20, %v3979_v7 }
  0x44   : > { %v1381_v35 = vcombine.low %v1373_v22, %v1380_v25  ;;  %v1385_v36 = vcombine.low %v850_v26, %v864_v14  ;;  %v1406_v37 = vrot.slane %v1384_v27, %v3979_v7  ;;  %v1414_v38 = vcombine.low %v1392_v23, %v1399_v28  ;;  %v4146_v26 = vld [vmem:[%s5193_s2] ss:$0 sm:$0xff] }
  0x45   : > { %v910_v39 = vrot.slane %v896_v32, %v3979_v7  ;;  %v1431_v40 = vcombine.low %v879_v30, %v886_v31  ;;  %v3687_v41 = vcombine.high %v879_v30, %v886_v31  ;;  %v926_v43 = vrot.slane %v3675_v29, %v3979_v7  ;;  %v4151_v28 = vld [vmem:[%s5194_s3] ss:$0 sm:$0xff] }
  0x46   : > { %3754 = vmatmul.mubr.msk.bf16.gmra.mxu0 %vm1544_vm1, %v1381_v35  ;;  %v1413_v44 = vrot.slane %v1385_v36, %v3979_v7  ;;  %v1422_v45 = vrot.slane %v1414_v38, %v3979_v7  ;;  %v934_v46 = vcombine.high %v3676_v34, %v3676_v34  ;;  %v941_v47 = vrot.slane %v3676_v34, %v3979_v7 }
  0x47   : > { %v1433_v48 = vcombine.low %v903_v33, %v910_v39  ;;  %v3688_v49 = vcombine.high %v903_v33, %v910_v39  ;;  %v1441_v50 = vrot.slane %v1431_v40, %v3979_v7  ;;  %v1448_v51 = vrot.slane %v3687_v41, %v3979_v7 }
  0x48   : > { %v1415_v52 = vcombine.low %v1406_v37, %v1413_v44  ;;  %v948_v53 = vrot.slane %v934_v46, %v3979_v7  ;;  %v949_v54 = vcombine.high %v941_v47, %v941_v47  ;;  %v958_v55 = vcombine.high %v3677_v42, %v3677_v42 }
  0x49   : > { %v1455_v56 = vrot.slane %v1433_v48, %v3979_v7  ;;  %v1462_v57 = vrot.slane %v3688_v49, %v3979_v7  ;;  %v1463_v58 = vcombine.low %v1441_v50, %v1448_v51  ;;  %v965_v59 = vrot.slane %v3677_v42, %v3979_v7 }
  0x4a   : > { %v1429_v60 = vrot.slane %v1415_v52, %v3979_v7  ;;  %v950_v61 = vcombine.high %v948_v53, %v948_v53  ;;  %v972_v62 = vrot.slane %v958_v55, %v3979_v7  ;;  %v1480_v63 = vcombine.low %v926_v43, %v941_v47 }
  0x4b   : > { %v1464_v1 = vcombine.low %v1455_v56, %v1462_v57  ;;  %v1471_v2 = vrot.slane %v1463_v58, %v3979_v7  ;;  %v973_v3 = vcombine.high %v965_v59, %v965_v59  ;;  %v1481_v4 = vcombine.low %v948_v53, %v949_v54 }
  0x4c   : > { %v1430_v6 = vcombine.low %v1422_v45, %v1429_v60  ;;  %v1482_v8 = vcombine.low %v950_v61, %v965_v59  ;;  %v1490_v9 = vrot.slane %v1480_v63, %v3979_v7  ;;  %v974_v10 = vcombine.high %v972_v62, %v972_v62 }
  0x4d   : > { %v1478_v11 = vrot.slane %v1464_v1, %v3979_v7  ;;  %v1483_v12 = vcombine.low %v972_v62, %v973_v3  ;;  %v1497_v13 = vrot.slane %v1481_v4, %v3979_v7  ;;  %v988_v14 = vrot.slane %v3678_v0, %v3979_v7 }
  0x4e   : > { %3757 = vmatprep.mubr.msk.bf16.mxu0 %vm1544_vm1, %v1430_v6  ;;  %v1504_v15 = vrot.slane %v1482_v8, %v3979_v7  ;;  %v3885_v30 = vmov 1983009808   ;;  %v4168_v48 = vstv %s3703_s21  ;;  %v4174_v54 = vadd.s32 16, %v3972_v5 }
  0x4f   : > { %v1479_v16 = vcombine.low %v1471_v2, %v1478_v11  ;;  %v1511_v17 = vrot.slane %v1483_v12, %v3979_v7  ;;  %v1512_v18 = vcombine.low %v1490_v9, %v1497_v13  ;;  %v1529_v19 = vcombine.low %v974_v10, %v988_v14 }
  0x50   : > { %vm2216_vm2 = vcmp.ge.s32.totalorder %v4168_v48, 0  ;;  %v2203_v59 = vadd.s32 1, %v4168_v48  ;;  %vm2226_vm3 = vcmp.lt.s32.totalorder %v4168_v48, 16  ;;  %v4185_v2 = vadd.s32 2, %v4168_v48 }
  0x51   : > { %3758 = vmatmul.mubr.msk.bf16.gmra.mxu0 %vm1544_vm1, %v1479_v16  ;;  %v1513_v20 = vcombine.low %v1504_v15, %v1511_v17  ;;  %v1520_v21 = vrot.slane %v1512_v18, %v3979_v7  ;;  %v1536_v22 = vrot.slane %v1529_v19, %v3979_v7  ;;  %v4189_v6 = vadd.s32 3, %v4168_v48  ;;  %vm4194_vm6 = vmand %vm2216_vm2, %vm2226_vm3 }
  0x52   : > { %vm2217_vm5 = vcmp.ge.s32.totalorder %v2203_v59, 0  ;;  %vm2281_vm7 = vcmp.le.s32.totalorder %v4174_v54, 16  ;;  %vm2227_vm8 = vcmp.lt.s32.totalorder %v2203_v59, 16  ;;  %vm2218_vm2 = vcmp.ge.s32.totalorder %v4185_v2, 0 }
  0x53   : > { %v1527_v23 = vrot.slane %v1513_v20, %v3979_v7  ;;  %v1543_v25 = vrot.slane %v1536_v22, %v3979_v7  ;;  %v1821_v7 = vunpack.c.l.s4 %v3885_v30  ;;  %vm2284_vm9 = vmand %vm4194_vm6, %vm2281_vm7  ;;  %vm2228_vm3 = vcmp.lt.s32.totalorder %v4185_v2, 16 }
  0x54   : > { %vm4225_vm10 = vmand %vm2217_vm5, %vm2227_vm8 }
  0x55   : > { %v1528_v24 = vcombine.low %v1520_v21, %v1527_v23  ;;  %v1822_v38 = vunpack.c.0.s8 %v1821_v7  ;;  %vm4241_vm11 = vmand %vm4225_vm10, %vm2246_vm4 }
  0x57   : > { %3761 = vmatprep.mubr.msk.bf16.mxu0 %vm1544_vm1, %v1528_v24  ;;  %v4165_v44 = vsub.s32 %v1822_v38, %v3972_v5 }
  0x59   : > { %3762 = vmatmul.mubr.msk.bf16.gmra.mxu0 %vm1544_vm1, %v1543_v25 }
  0xe7   : > { %v3743_v27 = vpop.f32.mrf.mxu0 }
  0xe8   : > { %v1722_v29 = vmul.f32 %v3743_v27, %v4146_v26  ;;  %v4210_v27 = vadd.s32 4, %v4168_v48 }
  0xe9   : > { %v1619_v31 = vpop.f32.mrf.mxu0 }
  0xea   : > { %v1752_v32 = vadd.f32 %v4151_v28, %v1722_v29  ;;  %v1720_v33 = vmul.f32 %v4146_v26, %v1619_v31  ;;  %v4213_v29 = vadd.s32 5, %v4168_v48  ;;  %vm2220_vm12 = vcmp.ge.s32.totalorder %v4210_v27, 0 }
  0xeb   : > { %v3744_v34 = vpop.f32.mrf.mxu0  ;;  %vm2230_vm13 = vcmp.lt.s32.totalorder %v4210_v27, 16 }
  0xec   : > { %v1775_v35 = vmax.f32 %v1752_v32, 0.0  ;;  %v1750_v36 = vadd.f32 %v4151_v28, %v1720_v33  ;;  %v1723_v37 = vmul.f32 %v3744_v34, %v4146_v26  ;;  %vm2221_vm14 = vcmp.ge.s32.totalorder %v4213_v29, 0  ;;  %vm4359_vm5 = vmand %vm2220_vm12, %vm2230_vm13 }
  0xed   : > { %v1622_v39 = vpop.f32.mrf.mxu0  ;;  %vm2231_vm15 = vcmp.lt.s32.totalorder %v4213_v29, 16  ;;  %vm2261_vm8 = vmand %vm4359_vm5, %vm2246_vm4 }
  0xee   : > { %v1773_v40 = vmax.f32 %v1750_v36, 0.0  ;;  %v1721_v41 = vmul.f32 %v4146_v26, %v1622_v39  ;;  %v1853_v42 = vcombine.high %v1775_v35, %v1775_v35  ;;  %v1753_v43 = vadd.f32 %v4151_v28, %v1723_v37  ;;  %vm4458_vm12 = vmand %vm2218_vm2, %vm2228_vm3 }
  0xef   : > { %v1860_v51 = vrot.slane %v1775_v35, %v4165_v44  ;;  %v4219_v36 = vadd.s32 6, %v4168_v48  ;;  %vm4481_vm13 = vmand %vm4458_vm12, %vm2246_vm4  ;;  %vm2862_vm2 = vsmask.f32 7424  ;;  %vm2219_vm3 = vcmp.ge.s32.totalorder %v4189_v6, 0 }
  0xf0   : > { %v1819_v45 = vcombine.high %v1773_v40, %v1773_v40  ;;  %v1751_v46 = vadd.f32 %v4151_v28, %v1721_v41  ;;  %v1867_v49 = vrot.slane %v1853_v42, %v4165_v44  ;;  %v1776_v50 = vmax.f32 %v1753_v43, 0.0 }
  0xf1   : > { %v1826_v60 = vrot.slane %v1773_v40, %v4165_v44  ;;  %v1868_v63 = vcombine.high %v1860_v51, %v1860_v51  ;;  %v2412_v15 = vrot.slane %v1860_v51, %v4165_v44 }
  0xf2   : > { %v1833_v55 = vrot.slane %v1819_v45, %v4165_v44  ;;  %v1774_v56 = vmax.f32 %v1751_v46, 0.0  ;;  %v1869_v61 = vcombine.high %v1867_v49, %v1867_v49  ;;  %v1877_v62 = vrot.slane %v1776_v50, %v4165_v44 }
  0xf3   : > { %v3747_v47 = vpop.f32.mrf.mxu0  ;;  %v1870_v3 = vcombine.high %v1776_v50, %v1776_v50  ;;  %v1834_v11 = vcombine.high %v1826_v60, %v1826_v60  ;;  %v2413_v16 = vcombine.low %v1868_v63, %v1867_v49  ;;  %v2814_v37 = vsel %vm2284_vm9, %v2412_v15, 0.0  ;;  %vm4387_vm9 = vmand %vm4194_vm6, %vm2246_vm4 }
  0xf4   : > { %v1726_v53 = vmul.f32 %v3747_v47, %v4146_v26  ;;  %v1835_v8 = vcombine.high %v1833_v55, %v1833_v55  ;;  %v1836_v9 = vcombine.high %v1774_v56, %v1774_v56  ;;  %v2414_v12 = vcombine.low %v1869_v61, %v1877_v62 }
  0xf5   : > { %v1635_v52 = vpop.f32.mrf.mxu0  ;;  %v1843_v13 = vrot.slane %v1774_v56, %v4165_v44  ;;  %v1884_v19 = vrot.slane %v1870_v3, %v4165_v44  ;;  %v1885_v20 = vcombine.high %v1877_v62, %v1877_v62  ;;  %v2372_v30 = vcombine.low %v1826_v60, %v1834_v11 }
  0xf6   : > { %v1724_v57 = vmul.f32 %v4146_v26, %v1635_v52  ;;  %v1756_v4 = vadd.f32 %v4151_v28, %v1726_v53  ;;  %v2373_v24 = vcombine.low %v1833_v55, %v1835_v8  ;;  %v1850_v25 = vrot.slane %v1836_v9, %v4165_v44 }
  0xf7   : > { %v3748_v58 = vpop.f32.mrf.mxu0  ;;  %v2428_v7 = vrot.slane %v2414_v12, %v4165_v44  ;;  %v1851_v31 = vcombine.high %v1843_v13, %v1843_v13  ;;  %v2421_v38 = vrot.slane %v2413_v16, %v4165_v44  ;;  %v2430_v39 = vcombine.low %v1885_v20, %v1884_v19 }
  0xf8   : > { %v1754_v0 = vadd.f32 %v4151_v28, %v1724_v57  ;;  %v1727_v18 = vmul.f32 %v3748_v58, %v4146_v26  ;;  %v1779_v21 = vmax.f32 %v1756_v4, 0.0  ;;  %v2387_v45 = vrot.slane %v2373_v24, %v4165_v44 }
  0xf9   : > { %v1638_v1 = vpop.f32.mrf.mxu0  ;;  %v1852_v46 = vcombine.high %v1850_v25, %v1850_v25  ;;  %v2380_v50 = vrot.slane %v2372_v30, %v4165_v44  ;;  %v4233_v51 = vcombine.low %v2421_v38, %v2428_v7  ;;  %v2389_v52 = vcombine.low %v1843_v13, %v1851_v31 }
  0xfa   : > { %v1777_v17 = vmax.f32 %v1754_v0, 0.0  ;;  %v1725_v22 = vmul.f32 %v4146_v26, %v1638_v1  ;;  %v1757_v35 = vadd.f32 %v4151_v28, %v1727_v18  ;;  %v1921_v40 = vcombine.high %v1779_v21, %v1779_v21 }
  0xfb   : > { %v1928_v53 = vrot.slane %v1779_v21, %v4165_v44  ;;  %v1886_v55 = vcombine.high %v1884_v19, %v1884_v19  ;;  %v2438_v60 = vrot.slane %v2430_v39, %v4165_v44  ;;  %v4251_v0 = vpack.c.bf16 %v2814_v37, %v2814_v37 }
  0xfc   : > { %v3751_v14 = vpop.f32.mrf.mxu0  ;;  %v1887_v34 = vcombine.high %v1777_v17, %v1777_v17  ;;  %v1755_v41 = vadd.f32 %v4151_v28, %v1725_v22  ;;  %v1894_v47 = vrot.slane %v1777_v17, %v4165_v44  ;;  %v1780_v57 = vmax.f32 %v1757_v35, 0.0 }
  0xfd   : > { %v1730_v32 = vmul.f32 %v3751_v14, %v4146_v26  ;;  %v4247_v61 = vrot.slane %v1921_v40, %v4165_v44  ;;  %v4253_v1 = vcombine.low %v2380_v50, %v2387_v45  ;;  %v2390_v3 = vcombine.low %v1850_v25, %v1852_v46 }
  0xfe   : > { %v1651_v23 = vpop.f32.mrf.mxu0  ;;  %v1901_v56 = vrot.slane %v1887_v34, %v4165_v44  ;;  %v1778_v62 = vmax.f32 %v1755_v41, 0.0  ;;  %v2431_v4 = vcombine.low %v1886_v55, %v1894_v47  ;;  %v2397_v9 = vrot.slane %v2389_v52, %v4165_v44 }
  0xff   : > { %v1760_v49 = vadd.f32 %v4151_v28, %v1730_v32  ;;  %v1936_v11 = vcombine.high %v1928_v53, %v1928_v53  ;;  %v2815_v14 = vsel %vm4241_vm11, %v4233_v51, 0.0  ;;  %v1938_v16 = vcombine.high %v1780_v57, %v1780_v57  ;;  %vm2287_vm11 = vmand %vm4225_vm10, %vm2281_vm7 }
 0x100   : > { %v3752_v33 = vpop.f32.mrf.mxu0  ;;  %v1903_v15 = vcombine.high %v1901_v56, %v1901_v56  ;;  %v1945_v17 = vrot.slane %v1780_v57, %v4165_v44  ;;  %v1937_v19 = vcombine.high %v4247_v61, %v4247_v61  ;;  %v1904_v20 = vcombine.high %v1778_v62, %v1778_v62 }
 0x101   : > { %v1783_v58 = vmax.f32 %v1760_v49, 0.0  ;;  %v1731_v12 = vmul.f32 %v3752_v33, %v4146_v26  ;;  %v1728_v21 = vmul.f32 %v4146_v26, %v1651_v23  ;;  %v2404_v25 = vrot.slane %v2390_v3, %v4165_v44 }
 0x102   : > { %v1654_v42 = vpop.f32.mrf.mxu0  ;;  %v2445_v30 = vrot.slane %v2431_v4, %v4165_v44  ;;  %v4272_v32 = vcombine.low %v1928_v53, %v1936_v11  ;;  %v1911_v34 = vrot.slane %v1778_v62, %v4165_v44  ;;  %v1902_v35 = vcombine.high %v1894_v47, %v1894_v47 }
 0x103   : > { %v1989_v8 = vcombine.high %v1783_v58, %v1783_v58  ;;  %v1761_v22 = vadd.f32 %v4151_v28, %v1731_v12  ;;  %v1996_v7 = vrot.slane %v1783_v58, %v4165_v44  ;;  %v1729_v31 = vmul.f32 %v4146_v26, %v1654_v42 }
 0x104   : > { %v4277_v37 = vcombine.low %v1901_v56, %v1903_v15  ;;  %v4280_v38 = vrot.slane %v1938_v16, %v4165_v44  ;;  %v1953_v39 = vcombine.high %v1945_v17, %v1945_v17  ;;  %v4282_v41 = vcombine.low %v1937_v19, %v1945_v17 }
 0x105   : > { %v2003_v18 = vrot.slane %v1989_v8, %v4165_v44  ;;  %v1918_v42 = vrot.slane %v1904_v20, %v4165_v44  ;;  %v1758_v45 = vadd.f32 %v4151_v28, %v1728_v21  ;;  %v1784_v46 = vmax.f32 %v1761_v22, 0.0 }
 0x106   : > { %v4249_v63 = vpop.f32.mrf.mxu0  ;;  %v4286_v49 = vcombine.low %v2397_v9, %v2404_v25  ;;  %v2446_v50 = vcombine.low %v2438_v60, %v2445_v30  ;;  %v2004_v52 = vcombine.high %v1996_v7, %v1996_v7  ;;  %v1759_v47 = vadd.f32 %v4151_v28, %v1729_v31 }
 0x107   : > { %v2005_v23 = vcombine.high %v2003_v18, %v2003_v18  ;;  %v2486_v53 = vrot.slane %v4272_v32, %v4165_v44  ;;  %v1919_v55 = vcombine.high %v1911_v34, %v1911_v34  ;;  %v4295_v58 = vrot.slane %v1902_v35, %v4165_v44 }
 0x108   : > { %v1667_v13 = vpop.f32.mrf.mxu0  ;;  %v2462_v60 = vrot.slane %v4277_v37, %v4165_v44  ;;  %v2006_v62 = vcombine.high %v1784_v46, %v1784_v46  ;;  %v1782_v3 = vmax.f32 %v1759_v47, 0.0  ;;  %v4302_v8 = vcombine.low %v1953_v39, %v4280_v38 }
 0x109   : > { %v2554_v56 = vcombine.low %v2003_v18, %v2005_v23  ;;  %v1732_v57 = vmul.f32 %v4146_v26, %v1667_v13  ;;  %v2503_v9 = vrot.slane %v4282_v41, %v4165_v44  ;;  %v1920_v11 = vcombine.high %v1918_v42, %v1918_v42 }
 0x10a   : > { %v4266_v24 = vpop.f32.mrf.mxu0  ;;  %v1781_v12 = vmax.f32 %v1758_v45, 0.0  ;;  %v2553_v15 = vcombine.low %v1996_v7, %v2004_v52  ;;  %v1972_v13 = vcombine.high %v1782_v3, %v1782_v3  ;;  %v1979_v16 = vrot.slane %v1782_v3, %v4165_v44 }
 0x10b   : > { %v2816_v17 = vsel %vm4225_vm10, %v2446_v50, 0.0  ;;  %v4311_v19 = vcombine.low %v1911_v34, %v1919_v55  ;;  %v2568_v20 = vrot.slane %v2554_v56, %v4165_v44  ;;  %v1954_v21 = vcombine.high %v4280_v38, %v4280_v38 }
 0x10c   : > { %v1670_v40 = vpop.f32.mrf.mxu0  ;;  %v1762_v22 = vadd.f32 %v4151_v28, %v1732_v57  ;;  %v2020_v25 = vrot.slane %v2006_v62, %v4165_v44  ;;  %v1986_v30 = vrot.slane %v1972_v13, %v4165_v44  ;;  %v1987_v7 = vcombine.high %v1979_v16, %v1979_v16 }
 0x10d   : > { %v1734_v31 = vmul.f32 %v4249_v63, %v4146_v26  ;;  %v2471_v35 = vcombine.low %v1918_v42, %v1920_v11  ;;  %v4324_v34 = vrot.slane %v1784_v46, %v4165_v44  ;;  %v4332_v45 = vpack.c.bf16 %v2816_v17, %v2815_v14 }
 0x10e   : > { %v1785_v39 = vmax.f32 %v1762_v22, 0.0  ;;  %v2561_v50 = vrot.slane %v2553_v15, %v4165_v44  ;;  %v1955_v63 = vcombine.high %v1781_v12, %v1781_v12  ;;  %v1988_v52 = vcombine.high %v1986_v30, %v1986_v30 }
 0x10f   : > { %v2536_v47 = vcombine.low %v1979_v16, %v1987_v7  ;;  %v4338_v46 = vrot.slane %v1781_v12, %v4165_v44  ;;  %3033 = vrot.lane.b32.xlu0 %v4332_v45, %s3886_s22  ;;  %v1733_v51 = vmul.f32 %v4146_v26, %v1670_v40  ;;  %v1764_v57 = vadd.f32 %v4151_v28, %v1734_v31 }
 0x110   : > { %v2023_v55 = vcombine.high %v1785_v39, %v1785_v39  ;;  %v2030_v56 = vrot.slane %v1785_v39, %v4165_v44  ;;  %v2569_v59 = vcombine.low %v2561_v50, %v2568_v20  ;;  %v2537_v14 = vcombine.low %v1986_v30, %v1988_v52 }
 0x111   : > { %v4299_v4 = vpop.f32.mrf.mxu0  ;;  %v2022_v62 = vcombine.high %v2020_v25, %v2020_v25  ;;  %v2021_v11 = vcombine.high %v4324_v34, %v4324_v34  ;;  %v2544_v12 = vrot.slane %v2536_v47, %v4165_v44  ;;  %v1735_v13 = vmul.f32 %v4266_v24, %v4146_v26 }
 0x112   : > { %v2037_v15 = vrot.slane %v2023_v55, %v4165_v44  ;;  %v2551_v16 = vrot.slane %v2537_v14, %v4165_v44  ;;  %v2038_v17 = vcombine.high %v2030_v56, %v2030_v56  ;;  %v1763_v22 = vadd.f32 %v4151_v28, %v1733_v51 }
 0x113   : > { %v4309_v18 = vpop.f32.mrf.mxu0  ;;  %v2578_v20 = vcombine.low %v2022_v62, %v2030_v56  ;;  %v2510_v30 = vrot.slane %v4302_v8, %v4165_v44  ;;  %v2469_v7 = vrot.slane %v4311_v19, %v4165_v44  ;;  %v2479_v27 = vrot.slane %v2471_v35, %v4165_v44 }
 0x114   : > { %v4373_v31 = vrot.slane %v1955_v63, %v4165_v44  ;;  %v2825_v39 = vsel %vm4359_vm5, %v2569_v59, 0.0  ;;  %v1970_v50 = vcombine.high %v4338_v46, %v4338_v46  ;;  %v2552_v52 = vcombine.low %v2544_v12, %v2551_v16 }
 0x115   : > { %v4321_v23 = vpop.f32.mrf.mxu0  ;;  %v1787_v47 = vmax.f32 %v1764_v57, 0.0  ;;  %v2577_v63 = vcombine.low %v2021_v11, %v2020_v25  ;;  %v1765_v55 = vadd.f32 %v4151_v28, %v1735_v13  ;;  %v1786_v56 = vmax.f32 %v1763_v22, 0.0 }
 0x116   : > { %v2039_v51 = vcombine.high %v2037_v15, %v2037_v15  ;;  %v2824_v59 = vsel %vm2261_vm8, %v2552_v52, 0.0  ;;  %v2592_v14 = vrot.slane %v2578_v20, %v4165_v44  ;;  %v2594_v62 = vcombine.low %v2038_v17, %v2037_v15 }
 0x117   : > { %v4335_v42 = vpop.f32.mrf.mxu0  ;;  %v2813_v57 = vsel %vm4194_vm6, %v4286_v49, 0.0  ;;  %v4396_v12 = vpack.c.bf16 %v2825_v39, %v2824_v59  ;;  %v2040_v16 = vcombine.high %v1786_v56, %v1786_v56  ;;  %v4399_v33 = vrot.slane %v1786_v56, %v4165_v44  ;;  %vm4416_vm6 = vmand %vm2221_vm14, %vm2231_vm15 }
 0x118   : > { %v2812_v25 = vsel %vm4387_vm9, %v4253_v1, 0.0  ;;  %v4407_v11 = vcombine.low %v2462_v60, %v2469_v7  ;;  %v2487_v10 = vcombine.low %v2479_v27, %v2486_v53  ;;  %v2057_v49 = vcombine.high %v1787_v47, %v1787_v47  ;;  %vm4446_vm10 = vmand %vm4416_vm6, %vm2246_vm4 }
 0x119   : > { %v4345_v3 = vpop.f32.mrf.mxu0  ;;  %v4420_v13 = vpack.c.bf16 %v2813_v57, %v2812_v25  ;;  %v2585_v1 = vrot.slane %v2577_v63, %v4165_v44  ;;  %v4423_v37 = vmax.f32 %v1765_v55, 0.0  ;;  %v2595_v60 = vcombine.low %v2039_v51, %v4399_v33  ;;  %3039 = vrot.lane.b32.xlu1 %v4396_v12, %s3886_s22  ;;  %vm2290_vm15 = vmand %vm4458_vm12, %vm2281_vm7 }
 0x11a   : > { %v1738_v32 = vmul.f32 %v4299_v4, %v4146_v26  ;;  %v2513_v29 = vcombine.low %v1970_v50, %v4373_v31  ;;  %v2064_v53 = vrot.slane %v1787_v47, %v4165_v44  ;;  %v2993_v20 = vrot.slane %v4251_v0, 1 }
 0x11b   : > { %v4365_v24 = vpop.f32.mrf.mxu0  ;;  %v2992_v17 = vrot.slane %v4420_v13, 1  ;;  %v2593_v22 = vcombine.low %v2585_v1, %v2592_v14  ;;  %v2602_v7 = vrot.slane %v2594_v62, %v4165_v44  ;;  %v2054_v4 = vrot.slane %v2040_v16, %v4165_v44 }
 0x11c   : > { %v2609_v27 = vrot.slane %v2595_v60, %v4165_v44  ;;  %v2071_v43 = vrot.slane %v2057_v49, %v4165_v44  ;;  %v1736_v52 = vmul.f32 %v4146_v26, %v4309_v18  ;;  %v2817_v47 = vsel %vm2287_vm11, %v4295_v58, 0.0 }
 0x11d   : > { %v3764_v35 = vpop.f32.mrf.mxu0  ;;  %v2994_v50 = vsel %vm2991_vm0, %v2992_v17, %v2993_v20  ;;  %v1768_v55 = vadd.f32 %v4151_v28, %v1738_v32  ;;  %v4466_v18 = vpack.c.bf16 %v2817_v47, %v2817_v47  ;;  %v2819_v58 = vsel %vm4458_vm12, %v2487_v10, 0.0  ;;  %vm2296_vm12 = vmand %vm4359_vm5, %vm2281_vm7 }
 0x11e   : > { %v2081_v35 = vrot.slane %v4423_v37, %v4165_v44  ;;  %v2610_v63 = vcombine.low %v2602_v7, %v2609_v27  ;;  %3016 = vrot.lane.b32.xlu0 %v2994_v50, %s3887_s23  ;;  %v2512_v2 = vcombine.low %v1954_v21, %v4338_v46  ;;  %v2995_v56 = vrot.slane %v4332_v45, 1 }
 0x11f   : > { %v1739_v51 = vmul.f32 %v4321_v23, %v4146_v26  ;;  %v2072_v14 = vcombine.high %v2064_v53, %v2064_v53  ;;  %v2827_v62 = vsel %vm4446_vm10, %v2593_v22, 0.0  ;;  %v2056_v57 = vcombine.high %v2054_v4, %v2054_v4  ;;  %vm2299_vm10 = vmand %vm4416_vm6, %vm2281_vm7 }
 0x120   : > { %v2828_v38 = vsel %vm4416_vm6, %v2610_v63, 0.0  ;;  %v2073_v21 = vcombine.high %v2071_v43, %v2071_v43  ;;  %v1766_v23 = vadd.f32 %v4151_v28, %v1736_v52  ;;  %v2996_v16 = vrot.slane %v4466_v18, 1 }
 0x121   : > { %v4489_v46 = vpack.c.bf16 %v2828_v38, %v2827_v62  ;;  %v2527_v25 = vrot.slane %v2513_v29, %v4165_v44  ;;  %v2089_v10 = vcombine.high %v2081_v35, %v2081_v35  ;;  %v1791_v49 = vmax.f32 %v1768_v55, 0.0 }
 0x122   : > { %v1769_v1 = vadd.f32 %v4151_v28, %v1739_v51  ;;  %vm3146_vm14 = vcmask 130048   ;;  %v4501_v60 = vcombine.low %v2503_v9, %v2510_v30  ;;  %v2818_v32 = vsel %vm4481_vm13, %v4407_v11, 0.0 }
 0x123   : > { %v2074_v29 = vcombine.high %v4423_v37, %v4423_v37  ;;  %v2997_v17 = vsel %vm2991_vm0, %v2995_v56, %v2996_v16  ;;  %3104 = vrot.lane.b32.xlu1 %v4489_v46, %s3888_s24  ;;  %v1971_v8 = vcombine.high %v4373_v31, %v4373_v31  ;;  %v2520_v41 = vrot.slane %v2512_v2, %v4165_v44 }
 0x124   : > { %v2619_v9 = vcombine.low %v2064_v53, %v2072_v14  ;;  %v2618_v30 = vcombine.low %v2054_v4, %v2056_v57  ;;  %3081 = vrot.lane.b32.xlu0 %v2997_v17, %s3889_s8  ;;  %v4519_v11 = vpack.c.bf16 %v2819_v58, %v2818_v32  ;;  %v4521_v37 = vcombine.low %v2071_v43, %v2073_v21 }
 0x125   : > { %v1789_v20 = vmax.f32 %v1766_v23, 0.0  ;;  %v1737_v22 = vmul.f32 %v4146_v26, %v4335_v42  ;;  %v4525_v7 = vcombine.low %v2520_v41, %v2527_v25  ;;  %v4527_v53 = vcombine.low %v2081_v35, %v2089_v10 }
 0x126   : > { %v2125_v4 = vcombine.high %v1791_v49, %v1791_v49  ;;  %v1792_v27 = vmax.f32 %v1769_v1, 0.0  ;;  %vm2229_vm8 = vcmp.lt.s32.totalorder %v4189_v6, 16  ;;  %v4532_v39 = vrot.slane %v2074_v29, %v4165_v44 }
 0x127   : > { %v2055_v43 = vcombine.high %v4399_v33, %v4399_v33  ;;  %v1767_v50 = vadd.f32 %v4151_v28, %v1737_v22  ;;  %v5217_v42 = vrot.slane %v4247_v61, %v4165_v44  ;;  %3041 = vrot.lane.b32.xlu1 %v4489_v46, %s3886_s22  ;;  %v2576_v47 = vrot.slane %v4324_v34, %v4165_v44  ;;  %vm4606_vm5 = vmand %vm2219_vm3, %vm2229_vm8 }
 0x128   : > { %v2633_v19 = vrot.slane %v2619_v9, %v4165_v44  ;;  %v2626_v35 = vrot.slane %v2618_v30, %v4165_v44  ;;  %3018 = vrot.lane.b32.xlu0 %v2997_v17, %s3887_s23  ;;  %v2643_v33 = vrot.slane %v4521_v37, %v4165_v44  ;;  %v2132_v61 = vrot.slane %v1791_v49, %v4165_v44  ;;  %vm4625_vm6 = vmand %vm4606_vm5, %vm2246_vm4 }
 0x129   : > { %v2820_v52 = vsel %vm2290_vm15, %v5217_v42, 0.0  ;;  %v2091_v55 = vcombine.high %v1789_v20, %v1789_v20  ;;  %v2998_v58 = vrot.slane %v4519_v11, 1  ;;  %v2650_v2 = vrot.slane %v4527_v53, %v4165_v44  ;;  %vm2293_vm3 = vmand %vm4606_vm5, %vm2281_vm7 }
 0x12a   : > { %v4546_v63 = vpack.c.bf16 %v2820_v52, %v2820_v52  ;;  %v4556_v34 = vrot.slane %v2125_v4, %v4165_v44  ;;  %v2142_v56 = vcombine.high %v1792_v27, %v1792_v27  ;;  %vm2222_vm9 = vcmp.ge.s32.totalorder %v4219_v36, 0 }
 0x12b   : > { %vm2232_vm11 = vcmp.lt.s32.totalorder %v4219_v36, 16  ;;  %v2617_v59 = vrot.slane %v2055_v43, %v4165_v44  ;;  %v2090_v14 = vcombine.high %v4532_v39, %v4532_v39  ;;  %v1790_v62 = vmax.f32 %v1767_v50, 0.0 }
 0x12c   : > { %v2999_v51 = vrot.slane %v4546_v63, 1  ;;  %v2866_v57 = vshll.u32 %v4420_v13, 16  ;;  %v4565_v38 = vcombine.low %v2626_v35, %v2633_v19  ;;  %v4568_v21 = vrot.slane %v1789_v20, %v4165_v44  ;;  %vm4638_vm13 = vmand %vm2222_vm9, %vm2232_vm11 }
 0x12d   : > { %v2871_v16 = vshll.u32 %v4251_v0, 16  ;;  %v2140_v25 = vcombine.high %v2132_v61, %v2132_v61  ;;  %v4575_v10 = vrot.slane %v2091_v55, %v4165_v44  ;;  %v2864_v49 = vshrl.u32 %v4420_v13, 16  ;;  %vm4653_vm15 = vmand %vm4638_vm13, %vm2246_vm4 }
 0x12e   : > { %v4571_v23 = vsel %vm2991_vm0, %v2998_v58, %v2999_v51  ;;  %v2868_v1 = vrot.slane %v2866_v57, 1  ;;  %v2141_v32 = vcombine.high %v4556_v34, %v4556_v34  ;;  %v2149_v0 = vrot.slane %v1792_v27, %v4165_v44  ;;  %vm4737_vm9 = vmand %vm4638_vm13, %vm2281_vm7 }
 0x12f   : > { %3713 = vmatprep.mubr.msk.bf16.mxu0 %vm3146_vm14, %v4571_v23  ;;  %v2156_v29 = vrot.slane %v2142_v56, %v4165_v44  ;;  %v2878_v17 = vshll.u32 %v4332_v45, 16  ;;  %v2108_v41 = vcombine.high %v1790_v62, %v1790_v62  ;;  %v2115_v9 = vrot.slane %v1790_v62, %v4165_v44 }
 0x130   : > { %v2869_v30 = vor.u32 %v2868_v1, %v2864_v49  ;;  %v2873_v20 = vrot.slane %v2871_v16, 1  ;;  %v2876_v15 = vshrl.u32 %v4332_v45, 16  ;;  %v2883_v4 = vshll.u32 %v4466_v18, 16 }
 0x131   : > { %v2880_v22 = vrot.slane %v2878_v17, 1  ;;  %v2829_v27 = vsel %vm2299_vm10, %v2617_v59, 0.0  ;;  %v2107_v43 = vcombine.high %v4575_v10, %v4575_v10  ;;  %v3007_v52 = vrot.slane %v4489_v46, 1 }
 0x132   : > { %v2874_v50 = vsel %vm2862_vm2, %v2869_v30, %v2873_v20  ;;  %v4599_v42 = vpack.c.bf16 %v2829_v27, %v2829_v27  ;;  %v2157_v19 = vcombine.high %v2149_v0, %v2149_v0  ;;  %v2158_v18 = vcombine.high %v2156_v29, %v2156_v29 }
 0x133   : > { %2959 = vrot.lane.b32.xlu0 %v2874_v50, %s3890_s9  ;;  %v2881_v35 = vor.u32 %v2880_v22, %v2876_v15  ;;  %v2826_v55 = vsel %vm2296_vm12, %v2576_v47, 0.0  ;;  %v2885_v58 = vrot.slane %v2883_v4, 1  ;;  %v2914_v59 = vshll.u32 %v4396_v12, 16 }
 0x134   : > { %v3008_v56 = vrot.slane %v4599_v42, 1  ;;  %v4612_v51 = vpack.c.bf16 %v2826_v55, %v2826_v55  ;;  %v4616_v6 = vrot.slane %v2108_v41, %v4165_v44  ;;  %v2123_v62 = vcombine.high %v2115_v9, %v2115_v9 }
 0x135   : > { %v2912_v57 = vshrl.u32 %v4396_v12, 16  ;;  %v1740_v16 = vmul.f32 %v4146_v26, %v4365_v24  ;;  %v2886_v49 = vsel %vm2862_vm2, %v2881_v35, %v2885_v58  ;;  %v2916_v17 = vrot.slane %v2914_v59, 1 }
 0x136   : > { %v4631_v1 = vsel %vm2991_vm0, %v3007_v52, %v3008_v56  ;;  %v2919_v41 = vshll.u32 %v4612_v51, 16  ;;  %v2700_v30 = vcombine.low %v2132_v61, %v2140_v25  ;;  %v2106_v20 = vcombine.high %v4568_v21, %v4568_v21 }
 0x137   : > { %3061 = vrot.lane.b32.xlu0 %v2886_v49, %s3891_s10  ;;  %3716 = vmatprep.mubr.msk.bf16.mxu1 %vm3146_vm14, %v4631_v1  ;;  %v1770_v15 = vadd.f32 %v4151_v28, %v1740_v16  ;;  %v2210_v22 = vadd.s32 8, %v4168_v48  ;;  %v2717_v61 = vcombine.low %v2149_v0, %v2157_v19  ;;  %v2718_v25 = vcombine.low %v2156_v29, %v2158_v18 }
 0x138   : > { %v2917_v4 = vor.u32 %v2916_v17, %v2912_v57  ;;  %v2921_v27 = vrot.slane %v2919_v41, 1  ;;  %v2701_v50 = vcombine.low %v4556_v34, %v2141_v32  ;;  %v2676_v52 = vcombine.low %v2107_v43, %v2115_v9 }
 0x139   : > { %v2677_v35 = vcombine.low %v2123_v62, %v4616_v6  ;;  %v2535_v55 = vrot.slane %v1971_v8, %v4165_v44  ;;  %v2821_v58 = vsel %vm4625_vm6, %v4501_v60, 0.0  ;;  %v2822_v0 = vsel %vm4606_vm5, %v4525_v7, 0.0 }
 0x13a   : > { %v4670_v29 = vsel %vm2862_vm2, %v2917_v4, %v2921_v27  ;;  %v1742_v34 = vmul.f32 %v4345_v3, %v4146_v26  ;;  %v2651_v31 = vcombine.low %v2643_v33, %v2650_v2  ;;  %v2830_v60 = vsel %vm4653_vm15, %v4565_v38, 0.0 }
 0x13b   : > { %v4691_v3 = vcombine.low %v2090_v14, %v4568_v21  ;;  %2961 = vrot.lane.b32.xlu0 %v2886_v49, %s3890_s9  ;;  %3067 = vrot.lane.b32.xlu1 %v4670_v29, %s3891_s10  ;;  %v1793_v8 = vmax.f32 %v1770_v15, 0.0  ;;  %v2708_v7 = vrot.slane %v2700_v30, %v4165_v44  ;;  %v4698_v37 = vcombine.low %v2106_v20, %v4575_v10 }
 0x13c   : > { %v2725_v53 = vrot.slane %v2717_v61, %v4165_v44  ;;  %v2732_v33 = vrot.slane %v2718_v25, %v4165_v44  ;;  %v2715_v2 = vrot.slane %v2701_v50, %v4165_v44  ;;  %v2684_v14 = vrot.slane %v2676_v52, %v4165_v44 }
 0x13d   : > { %v2691_v38 = vrot.slane %v2677_v35, %v4165_v44  ;;  %v2823_v21 = vsel %vm2293_vm3, %v2535_v55, 0.0  ;;  %v4705_v32 = vpack.c.bf16 %v2822_v0, %v2821_v58  ;;  %v4708_v9 = vadd.s32 7, %v4168_v48 }
 0x13e   : > { %v1772_v43 = vadd.f32 %v4151_v28, %v1742_v34  ;;  %vm2224_vm8 = vcmp.ge.s32.totalorder %v2210_v22, 0  ;;  %v2658_v10 = vrot.slane %v4532_v39, %v4165_v44  ;;  %v2831_v40 = vsel %vm4638_vm13, %v2651_v31, 0.0  ;;  %v1702_v39 = vpop.f32.mrf.mxu0 }
 0x13f   : > { %3098 = vrot.lane.b32.xlu0 %v4519_v11, %s3888_s24  ;;  %2967 = vrot.lane.b32.xlu1 %v4670_v29, %s3890_s9  ;;  %v2159_v19 = vcombine.high %v1793_v8, %v1793_v8  ;;  %v2166_v18 = vrot.slane %v1793_v8, %v4165_v44  ;;  %v4720_v56 = vpack.c.bf16 %v2831_v40, %v2830_v60  ;;  %v2890_v17 = vshll.u32 %v4519_v11, 16 }
 0x140   : > { %v2667_v59 = vrot.slane %v4691_v3, %v4165_v44  ;;  %v2733_v62 = vcombine.low %v2725_v53, %v2732_v33  ;;  %v4724_v57 = vpack.c.bf16 %v2823_v21, %v2823_v21  ;;  %v2716_v16 = vcombine.low %v2708_v7, %v2715_v2 }
 0x141   : > { %v2674_v47 = vrot.slane %v4698_v37, %v4165_v44  ;;  %v4728_v49 = vcombine.low %v2684_v14, %v2691_v38  ;;  %v1795_v41 = vmax.f32 %v1772_v43, 0.0  ;;  %v3001_v30 = vrot.slane %v4705_v32, 1 }
 0x142   : > { %v2926_v20 = vshll.u32 %v4489_v46, 16  ;;  %vm2234_vm11 = vcmp.lt.s32.totalorder %v2210_v22, 16  ;;  %vm2223_vm10 = vcmp.ge.s32.totalorder %v4708_v9, 0  ;;  %vm2233_vm12 = vcmp.lt.s32.totalorder %v4708_v9, 16 }
 0x143   : > { %3035 = vrot.lane.b32.xlu0 %v4519_v11, %s3886_s22  ;;  %3089 = vrot.lane.b32.xlu1 %v4631_v1, %s3889_s8  ;;  %v2173_v36 = vrot.slane %v2159_v19, %v4165_v44  ;;  %v2740_v61 = vrot.slane %v2166_v18, %v4165_v44  ;;  %v2888_v24 = vshrl.u32 %v4519_v11, 16  ;;  %vm2244_vm5 = vmand %vm2224_vm8, %vm2234_vm11  ;;  %v1741_v25 = vmul.f32 %v4146_v26, %v1702_v39 }
 0x144   : > { %v2174_v4 = vcombine.high %v2166_v18, %v2166_v18  ;;  %v3002_v27 = vrot.slane %v4724_v57, 1  ;;  %v2895_v50 = vshll.u32 %v4546_v63, 16  ;;  %vm2273_vm6 = vmand %vm2244_vm5, %vm2246_vm4  ;;  %v2837_v52 = vsel %vm2244_vm5, %v2733_v62, 0.0 }
 0x145   : > { %v2892_v35 = vrot.slane %v2890_v17, 1  ;;  %v2924_v55 = vshrl.u32 %v4489_v46, 16  ;;  %v2836_v58 = vsel %vm2273_vm6, %v2716_v16, 0.0  ;;  %v1771_v0 = vadd.f32 %v4151_v28, %v1741_v25  ;;  %vm2308_vm13 = vmand %vm2244_vm5, %vm2281_vm7 }
 0x146   : > { %v2199_v26 = vrot.slane %v1795_v41, %v4165_v44  ;;  %v4762_v22 = vsel %vm2991_vm0, %v3001_v30, %v3002_v27  ;;  %v2928_v34 = vrot.slane %v2926_v20, 1  ;;  %v4764_v63 = vpack.c.bf16 %v2837_v52, %v2836_v58  ;;  %vm4794_vm15 = vmand %vm2223_vm10, %vm2233_vm12  ;;  %v3835_v52 = vld [vmem:[%s5195_s4 + $0x38] sm:$0xff]  }
 0x147   : > { %3100 = vrot.lane.b32.xlu0 %v4705_v32, %s3888_s24  ;;  %3026 = vrot.lane.b32.xlu1 %v4631_v1, %s3887_s23  ;;  %v2832_v28 = vsel %vm4737_vm9, %v2658_v10, 0.0  ;;  %v1794_v31 = vmax.f32 %v1771_v0, 0.0  ;;  %v2175_v60 = vcombine.high %v2173_v36, %v2173_v36  ;;  %v2838_v8 = vsel %vm2308_vm13, %v2740_v61, 0.0  ;;  %vm4816_vm3 = vmand %vm4794_vm15, %vm2246_vm4 }
 0x148   : > { %v2741_v7 = vcombine.low %v2174_v4, %v2173_v36  ;;  %v2931_v53 = vshll.u32 %v4599_v42, 16  ;;  %v2859_v33 = vpack.c.bf16 %v2838_v8, %v2838_v8  ;;  %v3078_v2 = vrot.slane %v4764_v63, 1 }
 0x149   : > { %v2200_v14 = vcombine.high %v2199_v26, %v2199_v26  ;;  %v2893_v38 = vor.u32 %v2892_v35, %v2888_v24  ;;  %v2176_v21 = vcombine.high %v1794_v31, %v1794_v31  ;;  %v2183_v43 = vrot.slane %v1794_v31, %v4165_v44 }
 0x14a   : > { %v2929_v40 = vor.u32 %v2928_v34, %v2924_v55  ;;  %v4775_v19 = vpack.c.bf16 %v2832_v28, %v2832_v28  ;;  %v3079_v1 = vrot.slane %v2859_v33, 1  ;;  %v3052_v10 = vshll.u32 %v4764_v63, 16 }
 0x14b   : > { %3083 = vrot.lane.b32.xlu0 %v4571_v23, %s3889_s8  ;;  %3043 = vrot.lane.b32.xlu1 %v4720_v56, %s3886_s22  ;;  %v2897_v42 = vrot.slane %v2895_v50, 1  ;;  %v2190_v18 = vrot.slane %v2176_v21, %v4165_v44  ;;  %v2191_v62 = vcombine.high %v2183_v43, %v2183_v43  ;;  %v2742_v39 = vcombine.low %v2175_v60, %v2183_v43 }
 0x14c   : > { %v2749_v16 = vrot.slane %v2741_v7, %v4165_v44  ;;  %v2933_v17 = vrot.slane %v2931_v53, 1  ;;  %v4785_v41 = vsel %vm2991_vm0, %v3078_v2, %v3079_v1  ;;  %v3050_v30 = vshrl.u32 %v4764_v63, 16  ;;  %v3842_v2 = vld [vmem:[%s5195_s4] sm:$0xff]  }
 0x14d   : > { %v3010_v20 = vrot.slane %v4720_v56, 1  ;;  %v2192_v15 = vcombine.high %v2190_v18, %v2190_v18  ;;  %v2756_v36 = vrot.slane %v2742_v39, %v4165_v44  ;;  %v2758_v61 = vcombine.low %v2191_v62, %v2190_v18 }
 0x14e   : > { %v4799_v25 = vsel %vm2862_vm2, %v2929_v40, %v2933_v17  ;;  %v2902_v4 = vshll.u32 %v4705_v32, 16  ;;  %v3054_v27 = vrot.slane %v3052_v10, 1  ;;  %v3057_v50 = vshll.u32 %v2859_v33, 16  ;;  %v3837_v10 = vld [vmem:[%s5195_s4 + $0x28] sm:$0xff]  }
 0x14f   : > { %3022 = vrot.lane.b32.xlu0 %v4762_v22, %s3887_s23  ;;  %2969 = vrot.lane.b32.xlu1 %v4799_v25, %s3890_s9  ;;  %v3011_v9 = vrot.slane %v4775_v19, 1  ;;  %v2759_v35 = vcombine.low %v2192_v15, %v2199_v26  ;;  %v2766_v55 = vrot.slane %v2758_v61, %v4165_v44  ;;  %v2211_v58 = vadd.s32 9, %v4168_v48  ;;  %v3838_v61 = vld [vmem:[%s5195_s4 + $0x20] sm:$0xff]  }
 0x150   : > { %v3055_v0 = vor.u32 %v3054_v27, %v3050_v30  ;;  %v3059_v34 = vrot.slane %v3057_v50, 1  ;;  %v2757_v28 = vcombine.low %v2749_v16, %v2756_v36  ;;  %v2781_v60 = vrot.slane %v2200_v14, %v4165_v44  ;;  %v3836_v14 = vld [vmem:[%s5195_s4 + $0x30] sm:$0xff]  }
 0x151   : > { %vm2225_vm8 = vcmp.ge.s32.totalorder %v2211_v58, 0  ;;  %vm2235_vm9 = vcmp.lt.s32.totalorder %v2211_v58, 16  ;;  %v2773_v26 = vrot.slane %v2759_v35, %v4165_v44  ;;  %v3892_v8 = vmov 0   ;;  %v3839_v35 = vld [vmem:[%s5195_s4 + $0x18] sm:$0xff]  }
 0x152   : > { %3369 = vmatprep.subr.bf16.mxu0 %v3892_v8  ;;  %3765 = vmatprep.subr.bf16.mxu1 %v3892_v8  ;;  %v4825_v48 = vsel %vm2862_vm2, %v2893_v38, %v2897_v42  ;;  %v4828_v7 = vsel %vm2991_vm0, %v3010_v20, %v3011_v9  ;;  %v2904_v53 = vrot.slane %v2902_v4, 1  ;;  %v4831_v33 = vsel %vm2862_vm2, %v3055_v0, %v3059_v34  ;;  %vm4833_vm11 = vmand %vm2225_vm8, %vm2235_vm9  ;;  %v3840_v34 = vld [vmem:[%s5195_s4 + $0x10] sm:$0xff]  }
 0x153   : > { %3370 = vmatpush1.bf16.msra.mxu0 %v3835_v52  ;;  %3774 = vmatpush1.bf16.msra.mxu1 %v3835_v52  ;;  %v2675_v38 = vcombine.low %v2667_v59, %v2674_v47  ;;  %v2907_v21 = vshll.u32 %v4724_v57, 16  ;;  %vm2276_vm10 = vmand %vm4833_vm11, %vm2246_vm4  ;;  %v2774_v43 = vcombine.low %v2766_v55, %v2773_v26  ;;  %v2900_v37 = vshrl.u32 %v4705_v32, 16 }
 0x154   : > { %3126 = vrot.lane.b32.xlu0 %v4825_v48, %s3893_s15  ;;  %3091 = vrot.lane.b32.xlu1 %v4828_v7, %s3889_s8  ;;  %v2839_v40 = vsel %vm2276_vm10, %v2757_v28, 0.0  ;;  %vm2311_vm12 = vmand %vm4833_vm11, %vm2281_vm7  ;;  %v2834_v59 = vsel %vm4794_vm15, %v4728_v49, 0.0  ;;  %v3004_v50 = vrot.slane %v4396_v12, 1  ;;  %v2938_v52 = vshll.u32 %v4720_v56, 16 }
 0x155   : > { %3371 = vmatprep.subr.bf16.mxu0 %v3892_v8  ;;  %3766 = vmatprep.subr.bf16.mxu1 %v3892_v8  ;;  %v2840_v3 = vsel %vm4833_vm11, %v2774_v43, 0.0  ;;  %v2841_v5 = vsel %vm2311_vm12, %v2781_v60, 0.0  ;;  %v2905_v57 = vor.u32 %v2904_v53, %v2900_v37  ;;  %v2833_v42 = vsel %vm4816_vm3, %v2675_v38, 0.0  ;;  %vm2305_vm4 = vmand %vm4794_vm15, %vm2281_vm7 }
 0x156   : > { %v4867_v47 = vpack.c.bf16 %v2840_v3, %v2839_v40  ;;  %v2861_v1 = vpack.c.bf16 %v2841_v5, %v2841_v5  ;;  %v2909_v18 = vrot.slane %v2907_v21, 1  ;;  %v4883_v17 = vpack.c.bf16 %v2834_v59, %v2833_v42 }
 0x157   : > { %3372 = vmatpush1.bf16.msra.mxu0 %v3836_v14  ;;  %3775 = vmatpush1.bf16.msra.mxu1 %v3836_v14  ;;  %v3005_v55 = vrot.slane %v4612_v51, 1  ;;  %v2940_v0 = vrot.slane %v2938_v52, 1  ;;  %v2124_v28 = vcombine.high %v4616_v6, %v4616_v6  ;;  %v2936_v51 = vshrl.u32 %v4720_v56, 16  ;;  %v3841_v6 = vld [vmem:[%s5195_s4 + $0x8] sm:$0xff]  }
 0x158   : > { %3063 = vrot.lane.b32.xlu0 %v4825_v48, %s3891_s10  ;;  %3028 = vrot.lane.b32.xlu1 %v4828_v7, %s3887_s23  ;;  %v3115_v49 = vshrl.u32 %v4867_v47, 16  ;;  %v3117_v62 = vshll.u32 %v4867_v47, 16  ;;  %v3122_v39 = vshll.u32 %v2861_v1, 16  ;;  %v3143_v16 = vrot.slane %v4867_v47, 1 }
 0x159   : > { %3373 = vmatprep.subr.bf16.mxu0 %v3892_v8  ;;  %3767 = vmatprep.subr.bf16.mxu1 %v3892_v8  ;;  %v3144_v30 = vrot.slane %v2861_v1, 1  ;;  %v4886_v20 = vsel %vm2862_vm2, %v2905_v57, %v2909_v18  ;;  %v4916_v58 = vsel %vm2991_vm0, %v3004_v50, %v3005_v55  ;;  %v2943_v31 = vshll.u32 %v4775_v19, 16 }
 0x15a   : > { %v3119_v15 = vrot.slane %v3117_v62, 1  ;;  %v3124_v36 = vrot.slane %v3122_v39, 1  ;;  %v2941_v60 = vor.u32 %v2940_v0, %v2936_v51  ;;  %v2699_v26 = vrot.slane %v2124_v28, %v4165_v44 }
 0x15b   : > { %3374 = vmatpush1.bf16.msra.mxu0 %v3837_v10  ;;  %3776 = vmatpush1.bf16.msra.mxu1 %v3837_v10  ;;  %v4896_v4 = vsel %vm2991_vm0, %v3143_v16, %v3144_v30  ;;  %v2945_v19 = vrot.slane %v2943_v31, 1  ;;  %v3013_v24 = vrot.slane %v4883_v17, 1  ;;  %v2950_v21 = vshll.u32 %v4883_v17, 16 }
 0x15c   : > { %2965 = vrot.lane.b32.xlu0 %v4886_v20, %s3890_s9  ;;  %3108 = vrot.lane.b32.xlu1 %v4883_v17, %s3888_s24  ;;  %v3120_v27 = vor.u32 %v3119_v15, %v3115_v49  ;;  %v2835_v44 = vsel %vm2305_vm4, %v2699_v26, 0.0  ;;  %vm3163_vm7 = vcmask 261120   ;;  %vm3214_vm5 = vcmask 654336  }
 0x15d   : > { %3375 = vmatprep.subr.bf16.mxu0 %v3892_v8  ;;  %3768 = vmatprep.subr.bf16.mxu1 %v3892_v8  ;;  %v2946_v53 = vsel %vm2862_vm2, %v2941_v60, %v2945_v19  ;;  %v2857_v54 = vpack.c.bf16 %v2835_v44, %v2835_v44  ;;  %vm3231_vm6 = vcmask 785408   ;;  %vm3248_vm13 = vcmask 916480  }
 0x15e   : > { %v4903_v9 = vsel %vm2862_vm2, %v3120_v27, %v3124_v36 }
 0x15f   : > { %3376 = vmatpush1.bf16.msra.mxu0 %v3838_v61  ;;  %3777 = vmatpush1.bf16.msra.mxu1 %v3838_v61  ;;  %v3014_v14 = vrot.slane %v2857_v54, 1  ;;  %v2955_v43 = vshll.u32 %v2857_v54, 16 }
 0x160   : > { %3128 = vrot.lane.b32.xlu0 %v4886_v20, %s3893_s15  ;;  %3045 = vrot.lane.b32.xlu1 %v4883_v17, %s3886_s22 }
 0x161   : > { %3377 = vmatprep.subr.bf16.mxu0 %v3892_v8  ;;  %3769 = vmatprep.subr.bf16.mxu1 %v3892_v8  ;;  %v4967_v38 = vsel %vm2991_vm0, %v3013_v24, %v3014_v14  ;;  %v2957_v40 = vrot.slane %v2955_v43, 1  ;;  %vm3180_vm0 = vcmask 392192  }
 0x163   : > { %3378 = vmatpush1.bf16.msra.mxu0 %v3839_v35  ;;  %3778 = vmatpush1.bf16.msra.mxu1 %v3839_v35 }
 0x164   : > { %3087 = vrot.lane.b32.xlu0 %v4916_v58, %s3889_s8  ;;  %3110 = vrot.lane.b32.xlu1 %v4764_v63, %s3888_s24 }
 0x165   : > { %3379 = vmatprep.subr.bf16.mxu0 %v3892_v8  ;;  %3770 = vmatprep.subr.bf16.mxu1 %v3892_v8 }
 0x167   : > { %3380 = vmatpush1.bf16.msra.mxu0 %v3840_v34  ;;  %3779 = vmatpush1.bf16.msra.mxu1 %v3840_v34 }
 0x168   : > { %3024 = vrot.lane.b32.xlu0 %v4916_v58, %s3887_s23  ;;  %3047 = vrot.lane.b32.xlu1 %v4764_v63, %s3886_s22  ;;  %v3843_v63 = vld [vmem:[%s5195_s4 + $0x40] sm:$0xff]  }
 0x169   : > { %3381 = vmatprep.subr.bf16.mxu0 %v3892_v8  ;;  %3771 = vmatprep.subr.bf16.mxu1 %v3892_v8 }
 0x16b   : > { %3382 = vmatpush1.bf16.msra.mxu0 %v3841_v6  ;;  %3780 = vmatpush1.bf16.msra.mxu1 %v3841_v6 }
 0x16c   : > { %3106 = vrot.lane.b32.xlu0 %v4720_v56, %s3888_s24  ;;  %3134 = vrot.lane.b32.xlu1 %v2946_v53, %s3893_s15 }
 0x16d   : > { %3383 = vmatprep.subr.bf16.mxu0 %v3892_v8  ;;  %3772 = vmatprep.subr.bf16.mxu1 %v3892_v8 }
 0x16f   : > { %3384 = vmatpush1.bf16.msra.mxu0 %v3842_v2  ;;  %3781 = vmatpush1.bf16.msra.mxu1 %v3842_v2 }
 0x170   : > { %3132 = vrot.lane.b32.xlu0 %v4799_v25, %s3893_s15  ;;  %3071 = vrot.lane.b32.xlu1 %v2946_v53, %s3891_s10 }
 0x171   : > { %3399 = vmatprep.subr.bf16.mxu0 %v3892_v8  ;;  %3773 = vmatprep.subr.bf16.mxu1 %v3892_v8  ;;  %v2952_v8 = vrot.slane %v2950_v21, 1 }
 0x173   : > { %3400 = vmatpush2.bf16.msra.mxu0 %v3843_v63  ;;  %3782 = vmatpush2.bf16.msra.mxu1 %v3843_v63 }
 0x174   : > { %3069 = vrot.lane.b32.xlu0 %v4799_v25, %s3891_s10  ;;  %2971 = vrot.lane.b32.xlu1 %v2946_v53, %s3890_s9  ;;  %v2948_v25 = vshrl.u32 %v4883_v17, 16 }
 0x176   : > { %v2953_v37 = vor.u32 %v2952_v8, %v2948_v25 }
 0x178   : > { %2963 = vrot.lane.b32.xlu0 %v4825_v48, %s3890_s9  ;;  %3093 = vrot.lane.b32.xlu1 %v4967_v38, %s3889_s8  ;;  %v2958_v48 = vsel %vm2862_vm2, %v2953_v37, %v2957_v40  ;;  %vm3197_vm2 = vcmask 523264  }
 0x17c   : > { %3020 = vrot.lane.b32.xlu0 %v4571_v23, %s3887_s23  ;;  %3030 = vrot.lane.b32.xlu1 %v4967_v38, %s3887_s23  ;;  %s3644_s23 = sshll.u32 %s5245_s25, 5 }
 0x180   : > { %3037 = vrot.lane.b32.xlu0 %v4705_v32, %s3886_s22  ;;  %3095 = vrot.lane.b32.xlu1 %v4785_v41, %s3889_s8  ;;  %s3643_s22 = sshll.u32 %s5247_s20, 1 }
 0x181   : > { %v3034_v23 = vpop.permute.xlu0 %3033 }
 0x184   : > { %3065 = vrot.lane.b32.xlu0 %v4886_v20, %s3891_s10  ;;  %3136 = vrot.lane.b32.xlu1 %v2958_v48, %s3893_s15 }
 0x188   : > { %3085 = vrot.lane.b32.xlu0 %v4762_v22, %s3889_s8  ;;  %3073 = vrot.lane.b32.xlu1 %v2958_v48, %s3891_s10 }
 0x18b   : > { %v3040_v59 = vpop.permute.xlu1 %3039 }
 0x18c   : > { %3102 = vrot.lane.b32.xlu0 %v4396_v12, %s3888_s24  ;;  %3138 = vrot.lane.b32.xlu1 %v4831_v33, %s3893_s15 }
 0x190   : > { %3130 = vrot.lane.b32.xlu0 %v4670_v29, %s3893_s15  ;;  %2973 = vrot.lane.b32.xlu1 %v2958_v48, %s3890_s9  ;;  %v3017_v3 = vpop.permute.xlu0 %3016 }
 0x194   : > { %3075 = vrot.lane.b32.xlu1 %v4831_v33, %s3891_s10 }
 0x195   : > { %v3105_v1 = vpop.permute.xlu1 %3104 }
 0x196   : > { %v3082_v5 = vpop.permute.xlu0 %3081 }
 0x198   : > { %3112 = vrot.lane.b32.xlu1 %v4867_v47, %s3888_s24  ;;  %s300_s24 = sadd.s32 %s3644_s23, %s3643_s22 }
 0x199   : > { %v5003_v42 = vpop.permute.xlu1 %3041  ;;  %s3645_s11 = sshll.u32 %s300_s24, 3 }
 0x19a   : > { %v3019_v57 = vpop.permute.xlu0 %3018  ;;  %s5112_s12 = scalar_lea.vmem %s5198_s7, %s3645_s11 }
 0x19c   : > { %3140 = vrot.lane.b32.xlu1 %v4903_v9, %s3893_s15 }
 0x1a5   : > { %v2960_v10 = vpop.permute.xlu0 %2959 }
 0x1a6   : > { %v3148_v47 = vsel %vm3146_vm14, %v4420_v13, %v2960_v10 }
 0x1a7   : > { %v3165_v15 = vsel %vm3163_vm7, %v3148_v47, %v3017_v3 }
 0x1a8   : > { %v3182_v27 = vsel %vm3180_vm0, %v3165_v15, %v3034_v23 }
 0x1a9   : > { %v3062_v29 = vpop.permute.xlu0 %3061 }
 0x1aa   : > { %v3199_v50 = vsel %vm3197_vm2, %v3182_v27, %v3062_v29 }
 0x1ab   : > { %v3216_v13 = vsel %vm3214_vm5, %v3199_v50, %v3082_v5 }
 0x1ad   : > { %v2962_v18 = vpop.permute.xlu0 %2961  ;;  %v3068_v49 = vpop.permute.xlu1 %3067 }
 0x1ae   : > { %v3150_v34 = vsel %vm3146_vm14, %v4332_v45, %v2962_v18 }
 0x1af   : > { %v3167_v51 = vsel %vm3163_vm7, %v3150_v34, %v3019_v57 }
 0x1b1   : > { %v3099_v62 = vpop.permute.xlu0 %3098  ;;  %v2968_v39 = vpop.permute.xlu1 %2967 }
 0x1b2   : > { %v3233_v35 = vsel %vm3231_vm6, %v3216_v13, %v3099_v62 }
 0x1b5   : > { %v3036_v33 = vpop.permute.xlu0 %3035  ;;  %v5005_v16 = vpop.permute.xlu1 %3089 }
 0x1b6   : > { %v3184_v6 = vsel %vm3180_vm0, %v3167_v51, %v3036_v33 }
 0x1b9   : > { %v3101_v30 = vpop.permute.xlu0 %3100  ;;  %v5009_v20 = vpop.permute.xlu1 %3026 }
 0x1bd   : > { %v3084_v36 = vpop.permute.xlu0 %3083  ;;  %v5012_v61 = vpop.permute.xlu1 %3043 }
 0x1c1   : > { %v3023_v52 = vpop.permute.xlu0 %3022  ;;  %v2970_v9 = vpop.permute.xlu1 %2969 }
 0x1c6   : > { %v3127_v55 = vpop.permute.xlu0 %3126  ;;  %v3092_v0 = vpop.permute.xlu1 %3091 }
 0x1c7   : > { %v3250_v28 = vsel %vm3248_vm13, %v3233_v35, %v3127_v55 }
 0x1c8   : > { %3402 = vmatmul.mubr.bf16.vlgmr.msra.gmra.mxu0 %v3250_v28 }
 0x1c9   : > { %3714 = vmatprep.mubr.msk.bf16.mxu0 %vm3146_vm14, %v4762_v22 }
 0x1ca   : > { %v3064_v31 = vpop.permute.xlu0 %3063  ;;  %v3029_v60 = vpop.permute.xlu1 %3028 }
 0x1cb   : > { %v3201_v26 = vsel %vm3197_vm2, %v3184_v6, %v3064_v31 }
 0x1cc   : > { %v3218_v2 = vsel %vm3214_vm5, %v3201_v26, %v3084_v36 }
 0x1cd   : > { %v3235_v45 = vsel %vm3231_vm6, %v3218_v2, %v3101_v30 }
 0x1ce   : > { %v2966_v19 = vpop.permute.xlu0 %2965  ;;  %v3109_v53 = vpop.permute.xlu1 %3108 }
 0x1cf   : > { %v3154_v22 = vsel %vm3146_vm14, %v4705_v32, %v2966_v19  ;;  %v3156_v32 = vsel %vm3146_vm14, %v4396_v12, %v2968_v39 }
 0x1d0   : > { %v3171_v21 = vsel %vm3163_vm7, %v3154_v22, %v3023_v52 }
 0x1d1   : > { %v3188_v25 = vsel %vm3180_vm0, %v3171_v21, %v3040_v59 }
 0x1d2   : > { %v3129_v44 = vpop.permute.xlu0 %3128  ;;  %v3046_v54 = vpop.permute.xlu1 %3045  ;;  %v3205_v37 = vsel %vm3197_vm2, %v3188_v25, %v3068_v49 }
 0x1d3   : > { %v3253_v63 = vsel %vm3248_vm13, %v3235_v45, %v3129_v44 }
 0x1d4   : > { %3410 = vmatmul.mubr.bf16.gmra.mxu0 %v3253_v63 }
 0x1d5   : > { %3715 = vmatprep.mubr.msk.bf16.mxu0 %vm3146_vm14, %v4916_v58 }
 0x1d6   : > { %v3088_v24 = vpop.permute.xlu0 %3087  ;;  %v3111_v14 = vpop.permute.xlu1 %3110 }
 0x1d7   : > { %v3222_v23 = vsel %vm3214_vm5, %v3205_v37, %v3088_v24  ;;  %v5105_v37 = vld [vmem:[%s5197_s6] ss:$0 sm:$0xff] }
 0x1d8   : > { %v3239_v58 = vsel %vm3231_vm6, %v3222_v23, %v3105_v1  ;;  %v3158_v1 = vsel %vm3146_vm14, %v4489_v46, %v2970_v9 }
 0x1da   : > { %v3025_v8 = vpop.permute.xlu0 %3024  ;;  %v5034_v43 = vpop.permute.xlu1 %3047 }
 0x1db   : > { %v3173_v57 = vsel %vm3163_vm7, %v3156_v32, %v3025_v8 }
 0x1dc   : > { %v3190_v59 = vsel %vm3180_vm0, %v3173_v57, %v5003_v42 }
 0x1de   : > { %v3107_v40 = vpop.permute.xlu0 %3106  ;;  %v3135_v48 = vpop.permute.xlu1 %3134 }
 0x1e2   : > { %v3133_v3 = vpop.permute.xlu0 %3132  ;;  %v3072_v5 = vpop.permute.xlu1 %3071 }
 0x1e3   : > { %v3259_v10 = vsel %vm3248_vm13, %v3239_v58, %v3133_v3 }
 0x1e4   : > { %3426 = vmatmul.mubr.bf16.vlgmr.msra.gmra.mxu1 %v3259_v10 }
 0x1e5   : > { %3717 = vmatprep.mubr.msk.bf16.mxu1 %vm3146_vm14, %v4828_v7  ;;  %v3175_v7 = vsel %vm3163_vm7, %v3158_v1, %v5009_v20 }
 0x1e6   : > { %v3070_v29 = vpop.permute.xlu0 %3069  ;;  %v2972_v18 = vpop.permute.xlu1 %2971 }
 0x1e7   : > { %v3207_v49 = vsel %vm3197_vm2, %v3190_v59, %v3070_v29  ;;  %v3160_v50 = vsel %vm3146_vm14, %v4720_v56, %v2972_v18 }
 0x1e8   : > { %v3224_v12 = vsel %vm3214_vm5, %v3207_v49, %v5005_v16  ;;  %v3192_v16 = vsel %vm3180_vm0, %v3175_v7, %v5012_v61 }
 0x1e9   : > { %v3241_v62 = vsel %vm3231_vm6, %v3224_v12, %v3107_v40  ;;  %v3209_v46 = vsel %vm3197_vm2, %v3192_v16, %v3072_v5 }
 0x1ea   : > { %v2964_v39 = vpop.permute.xlu0 %2963  ;;  %v3262_v33 = vsel %vm3248_vm13, %v3241_v62, %v3135_v48  ;;  %v3094_v47 = vpop.permute.xlu1 %3093  ;;  %v3226_v27 = vsel %vm3214_vm5, %v3209_v46, %v3092_v0 }
 0x1eb   : > { %v3243_v9 = vsel %vm3231_vm6, %v3226_v27, %v3109_v53  ;;  %v3152_v34 = vsel %vm3146_vm14, %v4519_v11, %v2964_v39 }
 0x1ec   : > { %3434 = vmatmul.mubr.bf16.gmra.mxu1 %v3262_v33 }
 0x1ed   : > { %3718 = vmatprep.mubr.msk.bf16.mxu1 %vm3146_vm14, %v4967_v38  ;;  %v3177_v38 = vsel %vm3163_vm7, %v3160_v50, %v3029_v60 }
 0x1ee   : > { %v3021_v42 = vpop.permute.xlu0 %3020  ;;  %v3031_v30 = vpop.permute.xlu1 %3030  ;;  %v3194_v35 = vsel %vm3180_vm0, %v3177_v38, %v3046_v54 }
 0x1ef   : > { %v3169_v51 = vsel %vm3163_vm7, %v3152_v34, %v3021_v42 }
 0x1f2   : > { %v3038_v15 = vpop.permute.xlu0 %3037  ;;  %v3096_v36 = vpop.permute.xlu1 %3095 }
 0x1f3   : > { %v3186_v6 = vsel %vm3180_vm0, %v3169_v51, %v3038_v15 }
 0x1f6   : > { %v3066_v52 = vpop.permute.xlu0 %3065  ;;  %v3137_v20 = vpop.permute.xlu1 %3136 }
 0x1f7   : > { %v3265_v13 = vsel %vm3248_vm13, %v3243_v9, %v3137_v20  ;;  %v3203_v26 = vsel %vm3197_vm2, %v3186_v6, %v3066_v52 }
 0x1f8   : > { %3442 = vmatmul.mubr.bf16.gmra.mxu1 %v3265_v13 }
 0x1f9   : > { %3719 = vmatprep.mubr.msk.bf16.mxu1 %vm3146_vm14, %v4785_v41 }
 0x1fa   : > { %v3086_v61 = vpop.permute.xlu0 %3085  ;;  %v3074_v55 = vpop.permute.xlu1 %3073 }
 0x1fb   : > { %v3211_v0 = vsel %vm3197_vm2, %v3194_v35, %v3074_v55  ;;  %v3220_v19 = vsel %vm3214_vm5, %v3203_v26, %v3086_v61 }
 0x1fc   : > { %v3228_v56 = vsel %vm3214_vm5, %v3211_v0, %v3094_v47 }
 0x1fd   : > { %v3245_v28 = vsel %vm3231_vm6, %v3228_v56, %v3111_v14 }
 0x1fe   : > { %v3103_v31 = vpop.permute.xlu0 %3102  ;;  %v3139_v60 = vpop.permute.xlu1 %3138 }
 0x1ff   : > { %v3268_v41 = vsel %vm3248_vm13, %v3245_v28, %v3139_v60  ;;  %v3237_v11 = vsel %vm3231_vm6, %v3220_v19, %v3103_v31 }
 0x200   : > { %3450 = vmatmul.mubr.bf16.gmra.mxu1 %v3268_v41 }
 0x201   : > { %3720 = vmatprep.mubr.msk.bf16.mxu1 %vm3146_vm14, %v4896_v4 }
 0x202   : > { %v3131_v53 = vpop.permute.xlu0 %3130  ;;  %v2974_v2 = vpop.permute.xlu1 %2973 }
 0x203   : > { %v3256_v44 = vsel %vm3248_vm13, %v3237_v11, %v3131_v53  ;;  %v3162_v45 = vsel %vm3146_vm14, %v4883_v17, %v2974_v2  ;;  %v5100_v17 = vld [vmem:[%s5196_s5] ss:$0 sm:$0xff] }
 0x204   : > { %3418 = vmatmul.mubr.bf16.gmra.mxu0 %v3256_v44  ;;  %v3179_v54 = vsel %vm3163_vm7, %v3162_v45, %v3031_v30 }
 0x205   : > { %v3196_v22 = vsel %vm3180_vm0, %v3179_v54, %v5034_v43 }
 0x206   : > { %v3076_v63 = vpop.permute.xlu1 %3075 }
 0x207   : > { %v3213_v4 = vsel %vm3197_vm2, %v3196_v22, %v3076_v63 }
 0x208   : > { %v3230_v14 = vsel %vm3214_vm5, %v3213_v4, %v3096_v36 }
 0x20a   : > { %v3113_v24 = vpop.permute.xlu1 %3112 }
 0x20b   : > { %v3247_v21 = vsel %vm3231_vm6, %v3230_v14, %v3113_v24 }
 0x20e   : > { %v3141_v8 = vpop.permute.xlu1 %3140 }
 0x20f   : > { %v3271_v25 = vsel %vm3248_vm13, %v3247_v21, %v3141_v8 }
 0x210   : > { %3458 = vmatmul.mubr.bf16.gmra.mxu1 %v3271_v25 }
 0x288   : > { %v3403_v43 = vpop.f32.mrf.mxu0 }
 0x289   : > { %v3473_v40 = vmul.f32 %v5100_v17, %v3403_v43 }
 0x28a   : > { %v3405_v48 = vpop.f32.mrf.mxu0 }
 0x28b   : > { %v3496_v23 = vadd.f32 %v5105_v37, %v3473_v40 }
 0x28c   : > { %v3406_v32 = vpop.f32.mrf.mxu0 }
 0x28d   : > { %v3512_v3 = vmax.f32 %v3496_v23, 0.0  ;;  %v3474_v58 = vmul.f32 %v5100_v17, %v3406_v32 }
 0x28e   : > { %v3408_v5 = vpop.f32.mrf.mxu0 }
 0x28f   : > { %3528 = vst.msk [vmem:[%s5112_s12] sm:$0xff] %vm1544_vm1, %v3512_v3  ;;  %v3497_v57 = vadd.f32 %v5105_v37, %v3474_v58 }
 0x291   : > { %v3513_v10 = vmax.f32 %v3497_v57, 0.0 }
 0x293   : > { %3529 = vst.msk [vmem:[%s5112_s12 + $0x8] sm:$0xff] %vm1544_vm1, %v3513_v10 }
 0x294   : > { %v3411_v59 = vpop.f32.mrf.mxu0 }
 0x295   : > { %v3475_v29 = vmul.f32 %v5100_v17, %v3411_v59 }
 0x296   : > { %v3413_v18 = vpop.f32.mrf.mxu0 }
 0x297   : > { %v3498_v49 = vadd.f32 %v5105_v37, %v3475_v29 }
 0x298   : > { %v3414_v12 = vpop.f32.mrf.mxu0 }
 0x299   : > { %v3514_v1 = vmax.f32 %v3498_v49, 0.0  ;;  %v3476_v62 = vmul.f32 %v5100_v17, %v3414_v12 }
 0x29a   : > { %v3416_v39 = vpop.f32.mrf.mxu0 }
 0x29b   : > { %3530 = vst.msk [vmem:[%s5112_s12 + $0x10] sm:$0xff] %vm1544_vm1, %v3514_v1  ;;  %v3499_v33 = vadd.f32 %v5105_v37, %v3476_v62 }
 0x29d   : > { %v3515_v47 = vmax.f32 %v3499_v33, 0.0 }
 0x29f   : > { %3531 = vst.msk [vmem:[%s5112_s12 + $0x18] sm:$0xff] %vm1544_vm1, %v3515_v47 }
 0x2a4   : > { %v3427_v7 = vpop.f32.mrf.mxu1 }
 0x2a5   : > { %v3479_v42 = vmul.f32 %v5100_v17, %v3427_v7 }
 0x2a6   : > { %v3429_v30 = vpop.f32.mrf.mxu1 }
 0x2a7   : > { %v3502_v16 = vadd.f32 %v5105_v37, %v3479_v42 }
 0x2a8   : > { %v3430_v46 = vpop.f32.mrf.mxu1 }
 0x2a9   : > { %v3518_v15 = vmax.f32 %v3502_v16, 0.0  ;;  %v3480_v36 = vmul.f32 %v5100_v17, %v3430_v46 }
 0x2aa   : > { %v3432_v27 = vpop.f32.mrf.mxu1 }
 0x2ab   : > { %3534 = vst.msk [vmem:[%s5112_s12 + $0x30] sm:$0xff] %vm1544_vm1, %v3518_v15  ;;  %v3503_v50 = vadd.f32 %v5105_v37, %v3480_v36 }
 0x2ac   : > { %v3435_v52 = vpop.f32.mrf.mxu1 }
 0x2ad   : > { %v3519_v20 = vmax.f32 %v3503_v50, 0.0  ;;  %v3481_v9 = vmul.f32 %v5100_v17, %v3435_v52 }
 0x2ae   : > { %v3437_v38 = vpop.f32.mrf.mxu1 }
 0x2af   : > { %3535 = vst.msk [vmem:[%s5112_s12 + $0x38] sm:$0xff] %vm1544_vm1, %v3519_v20  ;;  %v3504_v13 = vadd.f32 %v5105_v37, %v3481_v9 }
 0x2b0   : > { %v3438_v61 = vpop.f32.mrf.mxu1 }
 0x2b1   : > { %v3520_v35 = vmax.f32 %v3504_v13, 0.0  ;;  %v3482_v55 = vmul.f32 %v5100_v17, %v3438_v61 }
 0x2b2   : > { %v3440_v0 = vpop.f32.mrf.mxu1 }
 0x2b3   : > { %3536 = vst.msk [vmem:[%s5112_s12 + $0x40] sm:$0xff] %vm1544_vm1, %v3520_v35  ;;  %v3505_v56 = vadd.f32 %v5105_v37, %v3482_v55 }
 0x2b5   : > { %v3521_v34 = vmax.f32 %v3505_v56, 0.0 }
 0x2b7   : > { %3537 = vst.msk [vmem:[%s5112_s12 + $0x48] sm:$0xff] %vm1544_vm1, %v3521_v34 }
 0x2b8   : > { %v3443_v28 = vpop.f32.mrf.mxu1 }
 0x2b9   : > { %v3483_v51 = vmul.f32 %v5100_v17, %v3443_v28 }
 0x2ba   : > { %v3445_v31 = vpop.f32.mrf.mxu1 }
 0x2bb   : > { %v3506_v60 = vadd.f32 %v5105_v37, %v3483_v51 }
 0x2bc   : > { %v3446_v6 = vpop.f32.mrf.mxu1 }
 0x2bd   : > { %v3522_v41 = vmax.f32 %v3506_v60, 0.0  ;;  %v3484_v26 = vmul.f32 %v5100_v17, %v3446_v6 }
 0x2be   : > { %v3448_v19 = vpop.f32.mrf.mxu1 }
 0x2bf   : > { %3538 = vst.msk [vmem:[%s5112_s12 + $0x50] sm:$0xff] %vm1544_vm1, %v3522_v41  ;;  %v3507_v11 = vadd.f32 %v5105_v37, %v3484_v26 }
 0x2c0   : > { %v3451_v53 = vpop.f32.mrf.mxu1 }
 0x2c1   : > { %v3523_v2 = vmax.f32 %v3507_v11, 0.0  ;;  %v3485_v44 = vmul.f32 %v5100_v17, %v3451_v53 }
 0x2c2   : > { %v3453_v45 = vpop.f32.mrf.mxu1 }
 0x2c3   : > { %3539 = vst.msk [vmem:[%s5112_s12 + $0x58] sm:$0xff] %vm1544_vm1, %v3523_v2  ;;  %v3508_v54 = vadd.f32 %v5105_v37, %v3485_v44 }
 0x2c4   : > { %v3419_v63 = vpop.f32.mrf.mxu0  ;;  %v3454_v22 = vpop.f32.mrf.mxu1 }
 0x2c5   : > { %v3477_v4 = vmul.f32 %v5100_v17, %v3419_v63  ;;  %v3524_v24 = vmax.f32 %v3508_v54, 0.0  ;;  %v3486_v14 = vmul.f32 %v5100_v17, %v3454_v22 }
 0x2c6   : > { %v3421_v21 = vpop.f32.mrf.mxu0  ;;  %v3456_v8 = vpop.f32.mrf.mxu1 }
 0x2c7   : > { %v3500_v25 = vadd.f32 %v5105_v37, %v3477_v4  ;;  %3540 = vst.msk [vmem:[%s5112_s12 + $0x60] sm:$0xff] %vm1544_vm1, %v3524_v24  ;;  %v3509_v43 = vadd.f32 %v5105_v37, %v3486_v14 }
 0x2c8   : > { %v3422_v40 = vpop.f32.mrf.mxu0 }
 0x2c9   : > { %v3516_v48 = vmax.f32 %v3500_v25, 0.0  ;;  %v3478_v23 = vmul.f32 %v5100_v17, %v3422_v40  ;;  %v3525_v32 = vmax.f32 %v3509_v43, 0.0 }
 0x2ca   : > { %v3424_v3 = vpop.f32.mrf.mxu0 }
 0x2cb   : > { %3532 = vst.msk [vmem:[%s5112_s12 + $0x20] sm:$0xff] %vm1544_vm1, %v3516_v48  ;;  %v3501_v58 = vadd.f32 %v5105_v37, %v3478_v23  ;;  %3541 = vst.msk [vmem:[%s5112_s12 + $0x68] sm:$0xff] %vm1544_vm1, %v3525_v32 }
 0x2cd   : > { %v3517_v5 = vmax.f32 %v3501_v58, 0.0 }
 0x2cf   : > { %3533 = vst.msk [vmem:[%s5112_s12 + $0x28] sm:$0xff] %vm1544_vm1, %v3517_v5 }
 0x2d0   : > { %v3459_v57 = vpop.f32.mrf.mxu1 }
 0x2d1   : > { %v3487_v10 = vmul.f32 %v5100_v17, %v3459_v57 }
 0x2d2   : > { %v3461_v59 = vpop.f32.mrf.mxu1 }
 0x2d3   : > { %v3510_v29 = vadd.f32 %v5105_v37, %v3487_v10 }
 0x2d4   : > { %v3462_v18 = vpop.f32.mrf.mxu1 }
 0x2d5   : > { %v3526_v49 = vmax.f32 %v3510_v29, 0.0  ;;  %v3488_v12 = vmul.f32 %v5100_v17, %v3462_v18 }
 0x2d6   : > { %v3464_v1 = vpop.f32.mrf.mxu1 }
 0x2d7   : > { %3542 = vst.msk [vmem:[%s5112_s12 + $0x70] sm:$0xff] %vm1544_vm1, %v3526_v49  ;;  %v3511_v62 = vadd.f32 %v5105_v37, %v3488_v12 }
 0x2d9   : > { %v3527_v39 = vmax.f32 %v3511_v62, 0.0 }
 0x2db   : > { %3543 = vst.msk [vmem:[%s5112_s12 + $0x78] sm:$0xff] %vm1544_vm1, %v3527_v39 }
 0x2dc PF: > { %s17_s28 = sadd.s32 1, %s3882_s28   ;;  %s5234_s24 = smov %s3874_s26 }
 0x2dd   : > { %p14_p7 = scmp.ge.s32.totalorder %s17_s28, 6   ;;  %s5235_s25 = smov %s3878_s27 }
 0x2de   : > { %s5236_s26 = smov %s5239_s29  ;;  %s5237_s27 = smov %s5243_s30 }
 0x2df   :  { %16 = sbr.rel (!%p14_p7) target bundleno = 3 (0x3), region = 79 }

</bundles_post_ra>
